<compile_context>
chip_gen: v7x
topology: tpu7x:2x2x1
jax: 0.10.0
libtpu: 0.0.40
codegen_flags: <defaults>
</compile_context>

<pallas_src>
import jax
import jax.numpy as jnp
from jax import lax
from jax.experimental import pallas as pl
from jax.experimental.pallas import tpu as pltpu


def attention_kernel(x_ref, w_ref, out_ref):
    # x_ref: (M, tb, D)   w_ref: (D, D)   out_ref: (tb, D)
    M = x_ref.shape[0]
    w = w_ref[...]

    num = None        # sum_m x_m * exp(score_m)        (tb, D)
    den = None        # sum_m exp(score_m)              (tb, D)
    zero_dims = None  # count of all-zero modalities    (tb, 1)

    # M is small and static -> unrolled; each iteration is a clean 2D MXU
    # matmul (no sublane-merging reshape inside the kernel).
    for m in range(M):
        x_m = x_ref[m]                                            # (tb, D)
        # x_m @ W^T without materializing a transpose.
        s_m = jnp.tanh(
            lax.dot_general(x_m, w, (((1,), (1,)), ((), ())),
                            preferred_element_type=jnp.float32)
        )
        # tanh output is in [-1, 1] -> exp is safe without max-subtraction.
        e_m = jnp.exp(s_m)
        contrib = x_m.astype(jnp.float32) * e_m
        # Missing-modality detection (matches PyTorch: modality.sum() == 0).
        zero_m = (jnp.sum(x_m, axis=1, keepdims=True) == 0.0).astype(jnp.float32)
        if m == 0:
            num, den, zero_dims = contrib, e_m, zero_m
        else:
            num = num + contrib
            den = den + e_m
            zero_dims = zero_dims + zero_m

    # zero_dims >= 0, so where(zero_dims > 0, zero_dims + 1, 1) == zero_dims + 1.
    scaler = zero_dims + 1.0                                      # (tb, 1)
    out = num * pl.reciprocal(den, approx=False) * scaler
    out_ref[...] = out.astype(out_ref.dtype)


def attention_forward(x, w, *, tb=128):
    """x: (M, B, D) float32, w: (D, D) float32 (PyTorch Linear weight)."""
    M, B, D = x.shape

    # Pad batch to a multiple of the tile (zero rows are harmless: they
    # produce zero outputs and are sliced off below).
    n_blocks = pl.cdiv(B, tb)
    B_pad = n_blocks * tb
    if B_pad != B:
        x = jnp.pad(x, ((0, 0), (0, B_pad - B), (0, 0)))

    out = pl.pallas_call(
        attention_kernel,
        out_shape=jax.ShapeDtypeStruct((B_pad, D), x.dtype),
        grid=(n_blocks,),
        in_specs=[
            # x: tile the batch axis, keep all modalities + full feature dim.
            pl.BlockSpec((M, tb, D), lambda j: (0, j, 0)),
            # Weight: constant block index -> fetched once, stays VMEM-resident.
            pl.BlockSpec((D, D), lambda j: (0, 0)),
        ],
        out_specs=pl.BlockSpec((tb, D), lambda j: (j, 0)),
        compiler_params=pltpu.CompilerParams(
            dimension_semantics=("parallel",),
        ),
    )(x, w)
    return out[:B]


def attention_ref(x, w):
    """Pure-JAX reference mirroring the PyTorch forward."""
    scores = jnp.tanh(jnp.einsum("mbd,ed->mbe", x, w))
    weights = jax.nn.softmax(scores, axis=0)
    out = jnp.sum(x * weights, axis=0)
    mod_sums = jnp.sum(x, axis=2)
    zero_dims = jnp.sum((mod_sums == 0.0).astype(x.dtype), axis=0)
    scaler = jnp.where(zero_dims > 0, zero_dims + 1.0, 1.0)
    return out * scaler[:, None]


if __name__ == "__main__":
    # Small but lane-dense / pipeline-exercising shapes:
    #   3 modalities, 256 patients (2 grid steps of 128), feature size 128.
    M, B, D = 3, 256, 128

    key = jax.random.PRNGKey(0)
    kx, kw = jax.random.split(key)

    x = jax.random.normal(kx, (M, B, D), dtype=jnp.float32)
    # Simulate missing modalities (exercises the scaling path):
    #   patient 0 missing one modality, patient 200 missing two.
    x = x.at[1, 0, :].set(0.0)
    x = x.at[0, 200, :].set(0.0)
    x = x.at[2, 200, :].set(0.0)

    # Deterministic Linear(size, size, bias=False) init: U(-1/sqrt(D), 1/sqrt(D))
    bound = 1.0 / (D ** 0.5)
    w = jax.random.uniform(kw, (D, D), dtype=jnp.float32,
                           minval=-bound, maxval=bound)

    out = attention_forward(x, w)
    out = jax.block_until_ready(out)

    ref = attention_ref(x, w)
    assert out.shape == (B, D)
    assert jnp.allclose(out, ref, atol=1e-5, rtol=1e-5)

    print("KERNEL_OK")
</pallas_src>

<mosaic_0001>
module attributes {stable_mosaic.version = 11 : i64} {
  func.func @attention_kernel(%arg0: i32, %arg1: memref<3x128x128xf32, #tpu.memory_space<vmem>>, %arg2: memref<128x128xf32, #tpu.memory_space<vmem>>, %arg3: memref<128x128xf32, #tpu.memory_space<vmem>>) attributes {dimension_semantics = [#tpu.dimension_semantics<parallel>], iteration_bounds = array<i64: 2>, scalar_prefetch = 0 : i64, scratch_operands = 0 : i64, tpu.core_type = #tpu.core_type<tc>, window_params = [{transform_indices = @transform_0, window_bounds = array<i64: 3, 128, 128>}, {pipeline_mode = #tpu.pipeline_mode<synchronous>, transform_indices = @transform_1, window_bounds = array<i64: 128, 128>}, {transform_indices = @transform_2, window_bounds = array<i64: 128, 128>}]} {
    %c0 = arith.constant 0 : index
    %c0_0 = arith.constant 0 : index
    %0 = vector.load %arg2[%c0, %c0_0] : memref<128x128xf32, #tpu.memory_space<vmem>>, vector<128x128xf32>
    %c0_1 = arith.constant 0 : index
    %c0_2 = arith.constant 0 : index
    %c0_3 = arith.constant 0 : index
    %1 = vector.load %arg1[%c0_1, %c0_2, %c0_3] : memref<3x128x128xf32, #tpu.memory_space<vmem>>, vector<1x128x128xf32>
    %2 = vector.shape_cast %1 : vector<1x128x128xf32> to vector<128x128xf32>
    %cst = arith.constant dense<0.000000e+00> : vector<128x128xf32>
    %3 = tpu.matmul %2, %0, %cst {dimension_numbers = #tpu.dot_dimension_numbers<[1], [1], [0], [0], [0, 0, 1, 0], [], []>} : vector<128x128xf32>, vector<128x128xf32>, vector<128x128xf32> -> vector<128x128xf32>
    %4 = math.tanh %3 : vector<128x128xf32>
    %5 = math.exp %4 : vector<128x128xf32>
    %6 = arith.mulf %2, %5 : vector<128x128xf32>
    %cst_4 = arith.constant dense<0.000000e+00> : vector<128xf32>
    %7 = vector.multi_reduction <add>, %2, %cst_4 [1] : vector<128x128xf32> to vector<128xf32>
    %8 = vector.shape_cast %7 : vector<128xf32> to vector<128x1xf32>
    %cst_5 = arith.constant 0.000000e+00 : f32
    %9 = vector.broadcast %cst_5 : f32 to vector<128x1xf32>
    %10 = arith.cmpf oeq, %8, %9 : vector<128x1xf32>
    %11 = arith.extui %10 : vector<128x1xi1> to vector<128x1xi32>
    %12 = arith.sitofp %11 : vector<128x1xi32> to vector<128x1xf32>
    %c1 = arith.constant 1 : index
    %c0_6 = arith.constant 0 : index
    %c0_7 = arith.constant 0 : index
    %13 = vector.load %arg1[%c1, %c0_6, %c0_7] : memref<3x128x128xf32, #tpu.memory_space<vmem>>, vector<1x128x128xf32>
    %14 = vector.shape_cast %13 : vector<1x128x128xf32> to vector<128x128xf32>
    %cst_8 = arith.constant dense<0.000000e+00> : vector<128x128xf32>
    %15 = tpu.matmul %14, %0, %cst_8 {dimension_numbers = #tpu.dot_dimension_numbers<[1], [1], [0], [0], [0, 0, 1, 0], [], []>} : vector<128x128xf32>, vector<128x128xf32>, vector<128x128xf32> -> vector<128x128xf32>
    %16 = math.tanh %15 : vector<128x128xf32>
    %17 = math.exp %16 : vector<128x128xf32>
    %18 = arith.mulf %14, %17 : vector<128x128xf32>
    %cst_9 = arith.constant dense<0.000000e+00> : vector<128xf32>
    %19 = vector.multi_reduction <add>, %14, %cst_9 [1] : vector<128x128xf32> to vector<128xf32>
    %20 = vector.shape_cast %19 : vector<128xf32> to vector<128x1xf32>
    %cst_10 = arith.constant 0.000000e+00 : f32
    %21 = vector.broadcast %cst_10 : f32 to vector<128x1xf32>
    %22 = arith.cmpf oeq, %20, %21 : vector<128x1xf32>
    %23 = arith.extui %22 : vector<128x1xi1> to vector<128x1xi32>
    %24 = arith.sitofp %23 : vector<128x1xi32> to vector<128x1xf32>
    %25 = arith.addf %6, %18 : vector<128x128xf32>
    %26 = arith.addf %5, %17 : vector<128x128xf32>
    %27 = arith.addf %12, %24 : vector<128x1xf32>
    %c2 = arith.constant 2 : index
    %c0_11 = arith.constant 0 : index
    %c0_12 = arith.constant 0 : index
    %28 = vector.load %arg1[%c2, %c0_11, %c0_12] : memref<3x128x128xf32, #tpu.memory_space<vmem>>, vector<1x128x128xf32>
    %29 = vector.shape_cast %28 : vector<1x128x128xf32> to vector<128x128xf32>
    %cst_13 = arith.constant dense<0.000000e+00> : vector<128x128xf32>
    %30 = tpu.matmul %29, %0, %cst_13 {dimension_numbers = #tpu.dot_dimension_numbers<[1], [1], [0], [0], [0, 0, 1, 0], [], []>} : vector<128x128xf32>, vector<128x128xf32>, vector<128x128xf32> -> vector<128x128xf32>
    %31 = math.tanh %30 : vector<128x128xf32>
    %32 = math.exp %31 : vector<128x128xf32>
    %33 = arith.mulf %29, %32 : vector<128x128xf32>
    %cst_14 = arith.constant dense<0.000000e+00> : vector<128xf32>
    %34 = vector.multi_reduction <add>, %29, %cst_14 [1] : vector<128x128xf32> to vector<128xf32>
    %35 = vector.shape_cast %34 : vector<128xf32> to vector<128x1xf32>
    %cst_15 = arith.constant 0.000000e+00 : f32
    %36 = vector.broadcast %cst_15 : f32 to vector<128x1xf32>
    %37 = arith.cmpf oeq, %35, %36 : vector<128x1xf32>
    %38 = arith.extui %37 : vector<128x1xi1> to vector<128x1xi32>
    %39 = arith.sitofp %38 : vector<128x1xi32> to vector<128x1xf32>
    %40 = arith.addf %25, %33 : vector<128x128xf32>
    %41 = arith.addf %26, %32 : vector<128x128xf32>
    %42 = arith.addf %27, %39 : vector<128x1xf32>
    %cst_16 = arith.constant 1.000000e+00 : f32
    %43 = vector.broadcast %cst_16 : f32 to vector<128x1xf32>
    %44 = arith.addf %42, %43 : vector<128x1xf32>
    %45 = tpu.reciprocal %41 : vector<128x128xf32> -> vector<128x128xf32>
    %46 = arith.mulf %40, %45 : vector<128x128xf32>
    %47 = vector.broadcast %44 : vector<128x1xf32> to vector<128x128xf32>
    %48 = arith.mulf %46, %47 : vector<128x128xf32>
    %c0_17 = arith.constant 0 : index
    %c0_18 = arith.constant 0 : index
    %49 = vector.load %arg3[%c0_17, %c0_18] : memref<128x128xf32, #tpu.memory_space<vmem>>, vector<128x128xf32>
    tpu.vector_store %arg3[%c0_17, %c0_18], %48 {strides = array<i32>} : memref<128x128xf32, #tpu.memory_space<vmem>>, vector<128x128xf32>,
    return
  }
  func.func @transform_0(%arg0: i32) -> (i32, i32, i32) {
    %c0_i32 = arith.constant 0 : i32
    %c0_i32_0 = arith.constant 0 : i32
    %c0_i32_1 = arith.constant 0 : i32
    return %c0_i32, %arg0, %c0_i32_0 : i32, i32, i32
  }
  func.func @transform_1(%arg0: i32) -> (i32, i32) {
    %c0_i32 = arith.constant 0 : i32
    %c0_i32_0 = arith.constant 0 : i32
    %c0_i32_1 = arith.constant 0 : i32
    return %c0_i32, %c0_i32_0 : i32, i32
  }
  func.func @transform_2(%arg0: i32) -> (i32, i32) {
    %c0_i32 = arith.constant 0 : i32
    %c0_i32_0 = arith.constant 0 : i32
    return %arg0, %c0_i32 : i32, i32
  }
}

</mosaic_0001>

<bundles_post_ra>
// kernel: tpu_custom_call.1
= control target key start
LH: loop header
LB: loop body
LE: loop exit
PB: predicated region body
PF: predicated region fallthrough
CT: control target
= control target key end

     0   :  { %7 = vsyncpa [#allocation3], 0  ;;  %s3354_s0 = inlined_call_operand.hbm [shape: f32[3,256,128], index: 0, kind: input, shape index: {}]   ;;  %s3355_s1 = inlined_call_operand.hbm [shape: f32[128,128], index: 1, kind: input, shape index: {}]   ;;  %s3356_s2 = inlined_call_operand.hbm [shape: f32[256,128], index: 2, kind: output, shape index: {}]  }
   0x1   :  { %9 = vsyncpa [#allocation3 + $0x1], 0 }
   0x2   :  { %10 = vsyncpa [#allocation6], 0 }
   0x3   :  { %11 = vsyncpa [#allocation4], 0 }
   0x4   :  { %13 = vsyncpa [#allocation4 + $0x1], 0  ;;  %s2327_s9 = smov 0   ;;  %s2329_s10 = smov 0  }
   0x5   :  { %s2331_s11 = smov 0   ;;  %s2333_s12 = smov 0  }
   0x6 LB: > { %s2348_s13 = sadd.s32 4294967295, %s2297_s12   ;;  %s1410_s14 = sadd.s32 4294967294, %s2297_s12   ;;  %s2297_s12 = sphi %s2333_s12, %s3454_s12   ;;  %s2293_s11 = sphi %s2331_s11, %s3453_s11   ;;  %s2289_s10 = sphi %s2329_s10, %s3452_s10   ;;  %s2285_s9 = sphi %s2327_s9, %s3451_s9  }
   0x7   : > { %s2352_s15 = sadd.s32 1, %s2297_s12   ;;  %s26_s16 = sadd.s32 1, %s2293_s11 }
   0x8   : > { %s23_s17 = ssub.s32 %s2297_s12, %s2352_s15  ;;  %p33_p0 = scmp.ne.s32.totalorder %s2293_s11, %s2289_s10 }
   0x9   : > { %p24_p1 = scmp.eq.s32.totalorder %s23_s17, 0  ;;  %p34_p2 = scmp.eq.s32.totalorder %s2297_s12, 0 }
   0xa   : > { %p39_p3 = scmp.ne.s32.totalorder %s2289_s10, %s2285_s9  ;;  %p3357_p4 = scmp.eq.s32.totalorder %s2348_s13, 0 }
   0xb   : > { %s2364_s18 = scalar_select %p24_p1, %s2293_s11, %s26_s16  }
   0xc   : > { %p2366_p5 = por %p34_p2, %p33_p0  ;;  %p2372_p6 = por %p3357_p4, %p39_p3 }
   0xd   : > { %p84_p7 = scmp.eq.s32.totalorder %s2348_s13, 1  ;;  %p90_p8 = scmp.eq.s32.totalorder %s1410_s14, 1 }
   0xe   : > { %s3377_s19 = scalar_select %p2366_p5, 1, 0 }
   0xf   : > { %s3378_s20 = scalar_select %p2372_p6, 1, 0 }
  0x10   : > { %p1411_p9 = scmp.ge.s32.totalorder %s2297_s12, 1  ;;  %p97_p10 = scmp.lt.s32.totalorder %s2297_s12, 3 }
  0x11   : > { %p2379_p11 = por %p84_p7, %p33_p0  ;;  %p2383_p12 = por %p90_p8, %p39_p3 }
  0x12   : > { %p2387_p13 = pnand %p1411_p9, %p97_p10  ;;  %s2299_s24 = smov [#allocation5]  }
  0x13   : > { %s3379_s21 = scalar_select %p2379_p11, 1, 0 }
  0x14   : > { %s3380_s22 = scalar_select %p2383_p12, 1, 0 }
  0x15   : > { %s3381_s23 = scalar_select %p2387_p13, 1, 0 }
  0x16   : > { %p1901_p1 = pneg %p2387_p13  ;;  %s109_s25 = sshll.u32 %s2299_s24, 4  ;;  %s110_s25 = int_to_ptr.vmem [resolvable:$true] %s109_s25 }
  0x17   : > { %s2199_s29 = scalar_lea.hbm %s3355_s1, 2048 }
  0x18   : > { %p2395_p2 = pnand %p1901_p1, %p3357_p4  ;;  %p2200_p0 = scmp.ne.s32.totalorder %s3355_s1, %s2199_s29 }
  0x19   : > { %p2206_p9 = scmp.lt.u32.totalorder %s2199_s29, %s3355_s1 }
  0x1a   : > { %p2201_p3 = pneg %p2395_p2 }
  0x1c   : > { %p2202_p7 = pnand %p2201_p3, %p2200_p0 }
  0x1e   : > { %p2203_p8 = pneg %p2202_p7 }
  0x20   : > { %p2208_p10 = pnand %p2206_p9, %p2203_p8 }
  0x22   : > { %2211 = shalt.err (!%p2208_p10)
}
  0x23   : > { %s2212_s6 = scalar_lea.vmem %s110_s25, 2048  ;;  %p2220_p11 = scmp.lt.s32.totalorder %s110_s25, %s110_s25 }
  0x24   : > { %p2213_p1 = scmp.ne.s32.totalorder %s110_s25, %s2212_s6  ;;  %p2221_p6 = scmp.lt.s32.totalorder %s2212_s6, %s2212_s6 }
  0x26   : > { %p2215_p4 = pnand %p2213_p1, %p2201_p3  ;;  %p2222_p13 = por %p2221_p6, %p2220_p11 }
  0x28   : > { %p2216_p12 = pneg %p2215_p4 }
  0x2a   : > { %p2223_p5 = pnand %p2222_p13, %p2216_p12 }
  0x2c   : > { %2226 = shalt.err (!%p2223_p5)
}
  0x2d   : > { %s2300_s7 = smov 128   ;;  %s2301_s8 = smov 8  }
  0x2e   : > { %1904 = dma.hbm_to_vmem [thread:$0]  (!%p2395_p2), %s3355_s1, 2048, %s110_s25, [#allocation6], %s2300_s7, %s2300_s7, %s2301_s8  }
  0x2f   : > { %p1413_p0 = scmp.ge.s32.totalorder %s2297_s12, 2 }
  0x31   : > { %119 = sbr.rel (%p1413_p0) target bundleno = 72 (0x48), region = 20 }
  0x38   : > { %s123_s17 = sand.u32 1, %s2293_s11   ;;  %s1506_s26 = sshll.u32 %s2297_s12, 11 }
  0x39   : > { %s1884_s24 = smul.u32 384, %s123_s17  ;;  %s2302_s27 = smov 4096  }
  0x3a   : > { %p3383_p4 = scmp.ne.s32.totalorder %s3377_s19, 0  ;;  %s133_s30 = scalar_lea.hbm %s3354_s0, %s1506_s26 }
  0x3b   : > { %s127_s4 = scalar_lea.vmem [#allocation2], %s1884_s24  ;;  %s2303_s6 = smov 2048  }
  0x3c   : > { %1889 = sst [smem:[#allocation9]] (%p3383_p4), %s2302_s27  ;;  %s146_s5 = sshll.u32 %s127_s4, 4  ;;  %s147_s5 = int_to_ptr.vmem [resolvable:$true] %s146_s5 }
  0x3d   : > { %s1888_s25 = scalar_select %p3383_p4, [#allocation0], [#allocation10] }
  0x3e   : > { %1890 = sst [smem:[#allocation9 + $0x1]] (%p3383_p4), %s2303_s6  ;;  %s2304_s7 = smov 16  }
  0x3f   : > { %s138_s3 = sld [smem:[%s1888_s25]]   ;;  %s2305_s8 = smov 128  }
  0x40   : > { %1891 = sst [smem:[#allocation9 + $0x2]] (%p3383_p4), %s2304_s7  ;;  %s2306_s14 = smov 8  }
  0x41   : > { %1892 = sst [smem:[#allocation9 + $0x3]] (%p3383_p4), %s2305_s8  ;;  %s124_s24 = scalar_lea.sflag [#allocation3], %s123_s17 }
  0x42   : > { %1893 = sst [smem:[#allocation9 + $0x4]] (%p3383_p4), %s2305_s8  ;;  %s2307_s27 = smov [#allocation8]  }
  0x43   : > { %1894 = sst [smem:[#allocation9 + $0x5]] (%p3383_p4), %s2306_s14 }
  0x45   : > { %s1416_s16 = sshll.u32 %s138_s3, 26 }
  0x46   : > { %s1417_s26 = sadd.s32 134217728, %s1416_s16 }
  0x47   : > { %1895 = dma.general (%p3383_p4), %s133_s30, 6144, %s147_s5, %s124_s24, %s2307_s27, [#allocation9], %s1417_s26, 0  }
  0x48 PF: > { %p3384_p5 = scmp.ne.s32.totalorder %s3381_s23, 0 }
  0x4a   : > { %171 = sbr.rel (%p3384_p5) target bundleno = 537 (0x219), region = 28 }
  0x51   : > { %s2442_s25 = sand.u32 1, %s2289_s10   ;;  %p3385_p6 = scmp.ne.s32.totalorder %s3378_s20, 0 }
  0x52   : > { %s1885_s28 = smul.u32 384, %s2442_s25  ;;  %s174_s29 = scalar_lea.sflag [#allocation3], %s2442_s25 }
  0x54   : > { %s2446_s4 = scalar_lea.vmem [#allocation2], %s1885_s28 }
  0x55   : > { %2272 = dma.done.wait (%p3385_p6), %s174_s29, 6144  }
  0x56   : > { %2274 = vsyncadd (%p3385_p6), %s174_s29, 4294961152  ;;  %p3386_p11 = scmp.eq.s32.totalorder %s2348_s13, 0 }
  0x58   : > { %2276 = dma.done.wait (%p3386_p11), [#allocation6], 2048   ;;  %p3387_p12 = pmov %p3386_p11 }
  0x59   : > { %v204_v0 = vld [vmem:[#allocation5] sm:$0xff]  ;;  %v205_v1 = vld [vmem:[#allocation5 + $0x8] sm:$0xff]  ;;  %v206_v2 = vld [vmem:[#allocation5 + $0x10] sm:$0xff]  ;;  %s1420_s19 = sshll.u32 %s2442_s25, 7  ;;  %s1507_s23 = sshll.u32 %s2348_s13, 11 }
  0x5a   : > { %2278 = vsyncadd (%p3387_p12), [#allocation6], 4294965248  ;;  %v2456_v3 = vpack.c.bf16 %v205_v1, %v204_v0  ;;  %v207_v4 = vld [vmem:[#allocation5 + $0x18] sm:$0xff]  ;;  %v2467_v6 = vld [vmem:[%s2446_s4] sm:$0xff]  ;;  %s3214_s20 = scalar_lea.vmem [#allocation7], %s1420_s19  ;;  %s3306_s5 = scalar_lea.hbm %s3356_s2, %s1507_s23 }
  0x5b   : > { %v2458_v5 = vpack.c.bf16 %v207_v4, %v206_v2  ;;  %v2470_v7 = vld [vmem:[%s2446_s4 + $0x80] sm:$0xff]  ;;  %v209_v9 = vld [vmem:[#allocation5 + $0x28] sm:$0xff]  ;;  %1636 = vmatprep.mubr.f32.mxu0 %v2467_v6  ;;  %v2475_v10 = vld [vmem:[%s2446_s4 + $0x10] sm:$0xff]  ;;  %445 = vadd.xlane.f32.xlu0 %v2467_v6  ;;  %s1327_s17 = sshll.u32 %s3214_s20, 4  ;;  %s1314_s13 = scalar_lea.sflag [#allocation4], %s2442_s25  ;;  %s3308_s17 = int_to_ptr.vmem [resolvable:$true] %s1327_s17 }
  0x5c   : > { %1773 = vmatprep.subr.bf16.mxu0 %v2456_v3  ;;  %1805 = vmatprep.subr.bf16.mxu1 %v2456_v3  ;;  %v208_v8 = vld [vmem:[#allocation5 + $0x20] sm:$0xff]  ;;  %v2480_v11 = vld [vmem:[%s2446_s4 + $0x18] sm:$0xff]  ;;  %v2485_v13 = vld [vmem:[%s2446_s4 + $0x8] sm:$0xff]  ;;  %s2227_s6 = scalar_lea.vmem %s3308_s17, 2048  ;;  %p3449_p2 = scmp.ne.s32.totalorder %s3379_s21, 0 }
  0x5d   : > { %1775 = vmatpush3.bf16.xpose.msra.mxu0 %v2456_v3  ;;  %1807 = vmatpush3.bf16.xpose.msra.mxu1 %v2456_v3  ;;  %v2482_v12 = vpack.c.bf16 %v209_v9, %v208_v8  ;;  %v2492_v14 = vld [vmem:[%s2446_s4 + $0x20] sm:$0xff]  ;;  %v2495_v15 = vld [vmem:[%s2446_s4 + $0x28] sm:$0xff]  ;;  %v210_v16 = vld [vmem:[#allocation5 + $0x30] sm:$0xff]  ;;  %p2228_p13 = scmp.ne.s32.totalorder %s3308_s17, %s2227_s6  ;;  %s2309_s7 = smov [#allocation7]  }
  0x5e   : > { %1777 = vmatprep.subr.bf16.mxu0 %v2458_v5  ;;  %1809 = vmatprep.subr.bf16.mxu1 %v2458_v5  ;;  %v211_v17 = vld [vmem:[#allocation5 + $0x38] sm:$0xff]  ;;  %v2502_v18 = vld [vmem:[%s2446_s4 + $0x30] sm:$0xff]  ;;  %v2514_v21 = vld [vmem:[%s2446_s4 + $0x40] sm:$0xff]  ;;  %s2231_s8 = sshll.u32 %s2309_s7, 4  ;;  %s2232_s8 = int_to_ptr.vmem [resolvable:$false] %s2231_s8 }
  0x5f   : > { %1692 = vmatprep.mubr.f32.mxu1 %v2470_v7  ;;  %449 = vadd.xlane.f32.xlu1 %v2475_v10  ;;  %v2505_v19 = vld [vmem:[%s2446_s4 + $0x38] sm:$0xff]  ;;  %v2507_v20 = vpack.c.bf16 %v211_v17, %v210_v16  ;;  %v2517_v22 = vld [vmem:[%s2446_s4 + $0x48] sm:$0xff]  ;;  %v212_v23 = vld [vmem:[#allocation5 + $0x40] sm:$0xff]  ;;  %p2229_p3 = pnand %p2228_p13, %p3449_p2  ;;  %s2233_s14 = scalar_lea.vmem %s2232_s8, 4096 }
  0x60   : > { %447 = vadd.xlane.f32.xlu0 %v2485_v13  ;;  %v213_v24 = vld [vmem:[#allocation5 + $0x48] sm:$0xff]  ;;  %v2524_v25 = vld [vmem:[%s2446_s4 + $0x50] sm:$0xff]  ;;  %v2527_v26 = vld [vmem:[%s2446_s4 + $0x58] sm:$0xff]  ;;  %p2234_p8 = scmp.lt.s32.totalorder %s3308_s17, %s2232_s8  ;;  %p2235_p9 = scmp.lt.s32.totalorder %s2233_s14, %s2227_s6 }
  0x61   : > { %3388 = vst [vmem:[#allocation14_spill] sm:$0xff] %v2524_v25  ;;  %3389 = vst [vmem:[#allocation15_spill] sm:$0xff] %v2527_v26  ;;  %v2529_v27 = vpack.c.bf16 %v213_v24, %v212_v23  ;;  %v2536_v28 = vld [vmem:[%s2446_s4 + $0x60] sm:$0xff]  ;;  %v2539_v29 = vld [vmem:[%s2446_s4 + $0x68] sm:$0xff]  ;;  %p2230_p7 = pneg %p2229_p3 }
  0x62   : > { %3390 = vst [vmem:[#allocation16_spill] sm:$0xff] %v2539_v29  ;;  %v214_v30 = vld [vmem:[#allocation5 + $0x50] sm:$0xff]  ;;  %v215_v31 = vld [vmem:[#allocation5 + $0x58] sm:$0xff]  ;;  %v216_v35 = vld [vmem:[#allocation5 + $0x60] sm:$0xff]  ;;  %p2236_p10 = por %p2235_p9, %p2234_p8 }
  0x63   : > { %451 = vadd.xlane.f32.xlu1 %v2480_v11  ;;  %v2546_v32 = vld [vmem:[%s2446_s4 + $0x70] sm:$0xff]  ;;  %v2549_v33 = vld [vmem:[%s2446_s4 + $0x78] sm:$0xff]  ;;  %v2551_v34 = vpack.c.bf16 %v215_v31, %v214_v30  ;;  %v217_v36 = vld [vmem:[#allocation5 + $0x68] sm:$0xff] }
  0x64   : > { %453 = vadd.xlane.f32.xlu0 %v2492_v14  ;;  %v2560_v37 = vld [vmem:[%s2446_s4 + $0x88] sm:$0xff]  ;;  %v2564_v38 = vpack.c.bf16 %v217_v36, %v216_v35  ;;  %v2567_v39 = vld [vmem:[%s2446_s4 + $0x90] sm:$0xff]  ;;  %v2570_v40 = vld [vmem:[%s2446_s4 + $0x98] sm:$0xff]  ;;  %p2237_p1 = pnand %p2236_p10, %p2230_p7 }
  0x65   : > { %1779 = vmatpush3.bf16.xpose.msra.mxu0 %v2458_v5  ;;  %1811 = vmatpush3.bf16.xpose.msra.mxu1 %v2458_v5  ;;  %v218_v41 = vld [vmem:[#allocation5 + $0x70] sm:$0xff]  ;;  %v219_v42 = vld [vmem:[#allocation5 + $0x78] sm:$0xff]  ;;  %v2579_v43 = vld [vmem:[%s2446_s4 + $0xa0] sm:$0xff] }
  0x66   : > { %1781 = vmatprep.subr.bf16.mxu0 %v2482_v12  ;;  %1813 = vmatprep.subr.bf16.mxu1 %v2482_v12  ;;  %v2582_v44 = vld [vmem:[%s2446_s4 + $0xa8] sm:$0xff]  ;;  %v2586_v45 = vpack.c.bf16 %v219_v42, %v218_v41  ;;  %v2589_v46 = vld [vmem:[%s2446_s4 + $0xb0] sm:$0xff]  ;;  %v2592_v47 = vld [vmem:[%s2446_s4 + $0xb8] sm:$0xff] }
  0x67   : > { %455 = vadd.xlane.f32.xlu1 %v2495_v15  ;;  %v2601_v48 = vld [vmem:[%s2446_s4 + $0xc0] sm:$0xff]  ;;  %v2604_v49 = vld [vmem:[%s2446_s4 + $0xc8] sm:$0xff]  ;;  %v2609_v50 = vld [vmem:[%s2446_s4 + $0xd0] sm:$0xff] }
  0x68   : > { %457 = vadd.xlane.f32.xlu0 %v2502_v18  ;;  %3391 = vst [vmem:[#allocation17_spill] sm:$0xff] %v2609_v50  ;;  %v2612_v51 = vld [vmem:[%s2446_s4 + $0xd8] sm:$0xff]  ;;  %v2621_v52 = vld [vmem:[%s2446_s4 + $0xe0] sm:$0xff]  ;;  %v2624_v53 = vld [vmem:[%s2446_s4 + $0xe8] sm:$0xff] }
  0x69   : > { %3392 = vst [vmem:[#allocation18_spill] sm:$0xff] %v2612_v51  ;;  %3393 = vst [vmem:[#allocation19_spill] sm:$0xff] %v2621_v52  ;;  %v2641_v54 = vld [vmem:[%s2446_s4 + $0xf0] sm:$0xff]  ;;  %v2644_v55 = vld [vmem:[%s2446_s4 + $0xf8] sm:$0xff] }
  0x6a   : > { %3394 = vst [vmem:[#allocation20_spill] sm:$0xff] %v2624_v53  ;;  %3395 = vst [vmem:[#allocation21_spill] sm:$0xff] %v2641_v54  ;;  %v1469_v56 = vld [vmem:[%s2446_s4 + $0x100] sm:$0xff]  ;;  %v2662_v57 = vld [vmem:[%s2446_s4 + $0x108] sm:$0xff] }
  0x6b   : > { %459 = vadd.xlane.f32.xlu1 %v2505_v19  ;;  %3396 = vst [vmem:[#allocation22_spill] sm:$0xff] %v2644_v55  ;;  %v1471_v58 = vld [vmem:[%s2446_s4 + $0x110] sm:$0xff]  ;;  %v1472_v59 = vld [vmem:[%s2446_s4 + $0x118] sm:$0xff]  ;;  %v1477_v60 = vld [vmem:[%s2446_s4 + $0x140] sm:$0xff] }
  0x6c   : > { %461 = vadd.xlane.f32.xlu0 %v2514_v21  ;;  %v1473_v61 = vld [vmem:[%s2446_s4 + $0x120] sm:$0xff]  ;;  %v1474_v62 = vld [vmem:[%s2446_s4 + $0x128] sm:$0xff]  ;;  %v1475_v63 = vld [vmem:[%s2446_s4 + $0x130] sm:$0xff] }
  0x6d   : > { %1783 = vmatpush3.bf16.xpose.msra.mxu0 %v2482_v12  ;;  %1815 = vmatpush3.bf16.xpose.msra.mxu1 %v2482_v12  ;;  %v1476_v0 = vld [vmem:[%s2446_s4 + $0x138] sm:$0xff]  ;;  %v1478_v1 = vld [vmem:[%s2446_s4 + $0x148] sm:$0xff]  ;;  %v1479_v2 = vld [vmem:[%s2446_s4 + $0x150] sm:$0xff] }
  0x6e   : > { %1785 = vmatprep.subr.bf16.mxu0 %v2507_v20  ;;  %1817 = vmatprep.subr.bf16.mxu1 %v2507_v20  ;;  %v1481_v4 = vld [vmem:[%s2446_s4 + $0x160] sm:$0xff]  ;;  %v1483_v8 = vld [vmem:[%s2446_s4 + $0x170] sm:$0xff]  ;;  %v1484_v9 = vld [vmem:[%s2446_s4 + $0x178] sm:$0xff] }
  0x6f   : > { %463 = vadd.xlane.f32.xlu1 %v2517_v22 }
  0x70   : > { %465 = vadd.xlane.f32.xlu0 %v2524_v25 }
  0x73   : > { %467 = vadd.xlane.f32.xlu1 %v2527_v26 }
  0x74   : > { %469 = vadd.xlane.f32.xlu0 %v2536_v28 }
  0x75   : > { %1787 = vmatpush3.bf16.xpose.msra.mxu0 %v2507_v20  ;;  %1819 = vmatpush3.bf16.xpose.msra.mxu1 %v2507_v20 }
  0x76   : > { %1789 = vmatprep.subr.bf16.mxu0 %v2529_v27  ;;  %1821 = vmatprep.subr.bf16.mxu1 %v2529_v27 }
  0x77   : > { %471 = vadd.xlane.f32.xlu1 %v2539_v29 }
  0x78   : > { %473 = vadd.xlane.f32.xlu0 %v2546_v32 }
  0x7b   : > { %475 = vadd.xlane.f32.xlu1 %v2549_v33 }
  0x7c   : > { %751 = vadd.xlane.f32.xlu0 %v2470_v7 }
  0x7d   : > { %1791 = vmatpush3.bf16.xpose.msra.mxu0 %v2529_v27  ;;  %1823 = vmatpush3.bf16.xpose.msra.mxu1 %v2529_v27 }
  0x7e   : > { %1793 = vmatprep.subr.bf16.mxu0 %v2551_v34  ;;  %1825 = vmatprep.subr.bf16.mxu1 %v2551_v34 }
  0x7f   : > { %753 = vadd.xlane.f32.xlu1 %v2560_v37 }
  0x80   : > { %755 = vadd.xlane.f32.xlu0 %v2567_v39 }
  0x83   : > { %757 = vadd.xlane.f32.xlu1 %v2570_v40 }
  0x84   : > { %759 = vadd.xlane.f32.xlu0 %v2579_v43 }
  0x85   : > { %1795 = vmatpush3.bf16.xpose.msra.mxu0 %v2551_v34  ;;  %1827 = vmatpush3.bf16.xpose.msra.mxu1 %v2551_v34 }
  0x86   : > { %1797 = vmatprep.subr.bf16.mxu0 %v2564_v38  ;;  %1829 = vmatprep.subr.bf16.mxu1 %v2564_v38 }
  0x87   : > { %761 = vadd.xlane.f32.xlu1 %v2582_v44 }
  0x88   : > { %763 = vadd.xlane.f32.xlu0 %v2589_v46 }
  0x8b   : > { %765 = vadd.xlane.f32.xlu1 %v2592_v47 }
  0x8c   : > { %767 = vadd.xlane.f32.xlu0 %v2601_v48 }
  0x8d   : > { %1799 = vmatpush3.bf16.xpose.msra.mxu0 %v2564_v38  ;;  %1831 = vmatpush3.bf16.xpose.msra.mxu1 %v2564_v38 }
  0x8e   : > { %1801 = vmatprep.subr.bf16.mxu0 %v2586_v45  ;;  %1833 = vmatprep.subr.bf16.mxu1 %v2586_v45 }
  0x8f   : > { %769 = vadd.xlane.f32.xlu1 %v2604_v49 }
  0x90   : > { %771 = vadd.xlane.f32.xlu0 %v2609_v50 }
  0x93   : > { %773 = vadd.xlane.f32.xlu1 %v2612_v51 }
  0x94   : > { %775 = vadd.xlane.f32.xlu0 %v2621_v52 }
  0x95   : > { %1803 = vmatpush3.bf16.xpose.msra.mxu0 %v2586_v45  ;;  %1835 = vmatpush3.bf16.xpose.msra.mxu1 %v2586_v45 }
  0x96   : > { %1837 = vmatprep.subr.bf16.mxu0 %v2456_v3  ;;  %1868 = vmatprep.subr.bf16.mxu1 %v2456_v3 }
  0x97   : > { %777 = vadd.xlane.f32.xlu1 %v2624_v53 }
  0x98   : > { %779 = vadd.xlane.f32.xlu0 %v2641_v54 }
  0x9b   : > { %781 = vadd.xlane.f32.xlu1 %v2644_v55 }
  0x9c   : > { %1637 = vmatmul.mubr.f32.vlgmr.msra.gmra.mrb[0].mxu0 %v2485_v13  ;;  %1693 = vmatmul.mubr.f32.vlgmr.msra.gmra.mrb[0].mxu1 %v2560_v37 }
  0x9d   : > { %1839 = vmatpush3.bf16.xpose.msra.mxu0 %v2456_v3  ;;  %1876 = vmatpush3.bf16.xpose.msra.mxu1 %v2456_v3  ;;  %v1480_v3 = vld [vmem:[%s2446_s4 + $0x158] sm:$0xff] }
  0x9e   : > { %1841 = vmatprep.subr.bf16.mxu0 %v2458_v5  ;;  %1869 = vmatprep.subr.bf16.mxu1 %v2458_v5 }
  0x9f   : > { %1639 = vmatprep.mubr.f32.mxu0 %v2475_v10  ;;  %1695 = vmatprep.mubr.f32.mxu1 %v2567_v39 }
  0xa0   : > { %1640 = vmatmul.mubr.f32.gmra.mrb[2].mxu0 %v2480_v11  ;;  %1696 = vmatmul.mubr.f32.gmra.mrb[2].mxu1 %v2570_v40 }
  0xa1   : > { %1642 = vmatprep.mubr.f32.mxu0 %v2492_v14  ;;  %1698 = vmatprep.mubr.f32.mxu1 %v2579_v43 }
  0xa2   : > { %1105 = vadd.xlane.f32.xlu0 %v1469_v56  ;;  %1107 = vadd.xlane.f32.xlu1 %v2662_v57 }
  0xa4   : > { %1643 = vmatmul.mubr.f32.gmra.mrb[4].mxu0 %v2495_v15  ;;  %1699 = vmatmul.mubr.f32.gmra.mrb[4].mxu1 %v2582_v44 }
  0xa5   : > { %1843 = vmatpush3.bf16.xpose.msra.mxu0 %v2458_v5  ;;  %1877 = vmatpush3.bf16.xpose.msra.mxu1 %v2458_v5  ;;  %v1482_v5 = vld [vmem:[%s2446_s4 + $0x168] sm:$0xff] }
  0xa6   : > { %1845 = vmatprep.subr.bf16.mxu0 %v2482_v12  ;;  %1870 = vmatprep.subr.bf16.mxu1 %v2482_v12 }
  0xa7   : > { %1645 = vmatprep.mubr.f32.mxu0 %v2502_v18  ;;  %1701 = vmatprep.mubr.f32.mxu1 %v2589_v46 }
  0xa8   : > { %1646 = vmatmul.mubr.f32.gmra.mrb[6].mxu0 %v2505_v19  ;;  %1702 = vmatmul.mubr.f32.gmra.mrb[6].mxu1 %v2592_v47 }
  0xa9   : > { %1648 = vmatprep.mubr.f32.mxu0 %v2514_v21  ;;  %1704 = vmatprep.mubr.f32.mxu1 %v2601_v48 }
  0xaa   : > { %1109 = vadd.xlane.f32.xlu0 %v1471_v58  ;;  %1111 = vadd.xlane.f32.xlu1 %v1472_v59 }
  0xac   : > { %1649 = vmatmul.mubr.f32.gmra.mrb[8].mxu0 %v2517_v22  ;;  %1705 = vmatmul.mubr.f32.gmra.mrb[8].mxu1 %v2604_v49 }
  0xad   : > { %1847 = vmatpush3.bf16.xpose.msra.mxu0 %v2482_v12  ;;  %1878 = vmatpush3.bf16.xpose.msra.mxu1 %v2482_v12 }
  0xae   : > { %1849 = vmatprep.subr.bf16.mxu0 %v2507_v20  ;;  %1871 = vmatprep.subr.bf16.mxu1 %v2507_v20 }
  0xaf   : > { %1651 = vmatprep.mubr.f32.mxu0 %v2524_v25  ;;  %1707 = vmatprep.mubr.f32.mxu1 %v2609_v50 }
  0xb0   : > { %1652 = vmatmul.mubr.f32.gmra.mrb[10].mxu0 %v2527_v26  ;;  %1708 = vmatmul.mubr.f32.gmra.mrb[10].mxu1 %v2612_v51 }
  0xb1   : > { %1654 = vmatprep.mubr.f32.mxu0 %v2536_v28  ;;  %1710 = vmatprep.mubr.f32.mxu1 %v2621_v52 }
  0xb2   : > { %1115 = vadd.xlane.f32.xlu1 %v1474_v62  ;;  %1113 = vadd.xlane.f32.xlu0 %v1473_v61 }
  0xb4   : > { %1655 = vmatmul.mubr.f32.gmra.mrb[12].mxu0 %v2539_v29  ;;  %1711 = vmatmul.mubr.f32.gmra.mrb[12].mxu1 %v2624_v53 }
  0xb5   : > { %1851 = vmatpush3.bf16.xpose.msra.mxu0 %v2507_v20  ;;  %1879 = vmatpush3.bf16.xpose.msra.mxu1 %v2507_v20 }
  0xb6   : > { %1853 = vmatprep.subr.bf16.mxu0 %v2529_v27  ;;  %1872 = vmatprep.subr.bf16.mxu1 %v2529_v27 }
  0xb7   : > { %1657 = vmatprep.mubr.f32.mxu0 %v2546_v32  ;;  %1713 = vmatprep.mubr.f32.mxu1 %v2641_v54 }
  0xb8   : > { %1658 = vmatmul.mubr.f32.gmra.mrb[14].mxu0 %v2549_v33  ;;  %1714 = vmatmul.mubr.f32.gmra.mrb[14].mxu1 %v2644_v55  ;;  %v3362_v33 = vmov 0.0  }
  0xb9   : > { %1748 = vmatprep.mubr.f32.mxu0 %v1469_v56  ;;  %1760 = vmatprep.mubr.f32.mxu1 %v1477_v60 }
  0xba   : > { %1119 = vadd.xlane.f32.xlu1 %v1476_v0  ;;  %1117 = vadd.xlane.f32.xlu0 %v1475_v63 }
  0xbd   : > { %1855 = vmatpush3.bf16.xpose.msra.mxu0 %v2529_v27  ;;  %1880 = vmatpush3.bf16.xpose.msra.mxu1 %v2529_v27 }
  0xbe   : > { %1857 = vmatprep.subr.bf16.mxu0 %v2551_v34  ;;  %1873 = vmatprep.subr.bf16.mxu1 %v2551_v34 }
  0xbf   : > { %1123 = vadd.xlane.f32.xlu1 %v1478_v1  ;;  %1121 = vadd.xlane.f32.xlu0 %v1477_v60 }
  0xc3   : > { %1127 = vadd.xlane.f32.xlu1 %v1480_v3  ;;  %1125 = vadd.xlane.f32.xlu0 %v1479_v2 }
  0xc5   : > { %1859 = vmatpush3.bf16.xpose.msra.mxu0 %v2551_v34  ;;  %1881 = vmatpush3.bf16.xpose.msra.mxu1 %v2551_v34 }
  0xc6   : > { %1861 = vmatprep.subr.bf16.mxu0 %v2564_v38  ;;  %1874 = vmatprep.subr.bf16.mxu1 %v2564_v38 }
  0xc7   : > { %1131 = vadd.xlane.f32.xlu1 %v1482_v5  ;;  %1129 = vadd.xlane.f32.xlu0 %v1481_v4 }
  0xcb   : > { %1135 = vadd.xlane.f32.xlu1 %v1484_v9  ;;  %1133 = vadd.xlane.f32.xlu0 %v1483_v8 }
  0xcd   : > { %1863 = vmatpush3.bf16.xpose.msra.mxu0 %v2564_v38  ;;  %1882 = vmatpush3.bf16.xpose.msra.mxu1 %v2564_v38 }
  0xce   : > { %1865 = vmatprep.subr.bf16.mxu0 %v2586_v45  ;;  %1875 = vmatprep.subr.bf16.mxu1 %v2586_v45 }
  0xd5   : > { %1867 = vmatpush3.bf16.xpose.msra.mxu0 %v2586_v45  ;;  %1883 = vmatpush3.bf16.xpose.msra.mxu1 %v2586_v45 }
  0xdc   : > { %1749 = vmatmul.mubr.f32.vlgmr.msra.gmra.mrb[16].mxu0 %v2662_v57  ;;  %1761 = vmatmul.mubr.f32.vlgmr.msra.gmra.mrb[16].mxu1 %v1478_v1 }
  0xdd   : > { %1751 = vmatprep.mubr.f32.mxu0 %v1471_v58  ;;  %1763 = vmatprep.mubr.f32.mxu1 %v1479_v2 }
  0xe0   : > { %1752 = vmatmul.mubr.f32.gmra.mrb[18].mxu0 %v1472_v59  ;;  %1764 = vmatmul.mubr.f32.gmra.mrb[18].mxu1 %v1480_v3 }
  0xe1   : > { %1754 = vmatprep.mubr.f32.mxu0 %v1473_v61  ;;  %1766 = vmatprep.mubr.f32.mxu1 %v1481_v4 }
  0xe4   : > { %1755 = vmatmul.mubr.f32.gmra.mrb[20].mxu0 %v1474_v62  ;;  %1767 = vmatmul.mubr.f32.gmra.mrb[20].mxu1 %v1482_v5 }
  0xe5   : > { %1757 = vmatprep.mubr.f32.mxu0 %v1475_v63  ;;  %1769 = vmatprep.mubr.f32.mxu1 %v1483_v8 }
  0xe8   : > { %1758 = vmatmul.mubr.f32.gmra.mrb[22].mxu0 %v1476_v0  ;;  %1770 = vmatmul.mubr.f32.gmra.mrb[22].mxu1 %v1484_v9  ;;  %v2716_v12 = vpop.xlane.xlu0 %445 }
  0xe9   : > { %vm477_vm2 = vcmp.eq.f32.partialorder %v2716_v12, 0.0 }
  0xec   : > { %v2740_v41 = vpop.xlane.xlu1 %449 }
  0xed   : > { %v2718_v16 = vpop.xlane.xlu0 %447  ;;  %vm479_vm3 = vcmp.eq.f32.partialorder %v2740_v41, 0.0 }
  0xee   : > { %vm478_vm4 = vcmp.eq.f32.partialorder %v2718_v16, 0.0 }
  0xf0   : > { %v2742_v42 = vpop.xlane.xlu1 %451 }
  0xf1   : > { %v2720_v17 = vpop.xlane.xlu0 %453  ;;  %vm480_vm5 = vcmp.eq.f32.partialorder %v2742_v42, 0.0 }
  0xf2   : > { %vm481_vm6 = vcmp.eq.f32.partialorder %v2720_v17, 0.0 }
  0xf4   : > { %v2744_v45 = vpop.xlane.xlu1 %455 }
  0xf5   : > { %v458_v20 = vpop.xlane.xlu0 %457  ;;  %vm482_vm7 = vcmp.eq.f32.partialorder %v2744_v45, 0.0 }
  0xf6   : > { %vm483_vm0 = vcmp.eq.f32.partialorder %v458_v20, 0.0 }
  0xf7   : > { %v1427_v34 = vsel %vm483_vm0, 1.0, %v3362_v33 }
  0xf8   : > { %v2746_v56 = vpop.xlane.xlu1 %459 }
  0xf9   : > { %v2722_v23 = vpop.xlane.xlu0 %461  ;;  %vm484_vm8 = vcmp.eq.f32.partialorder %v2746_v56, 0.0 }
  0xfa   : > { %vm485_vm9 = vcmp.eq.f32.partialorder %v2722_v23, 0.0 }
  0xfc   : > { %v2748_v57 = vpop.xlane.xlu1 %463 }
  0xfd   : > { %v2724_v24 = vpop.xlane.xlu0 %465  ;;  %vm486_vm10 = vcmp.eq.f32.partialorder %v2748_v57, 0.0 }
  0xfe   : > { %vm487_vm11 = vcmp.eq.f32.partialorder %v2724_v24, 0.0 }
 0x100   : > { %v2750_v58 = vpop.xlane.xlu1 %467 }
 0x101   : > { %v2726_v27 = vpop.xlane.xlu0 %469  ;;  %vm488_vm12 = vcmp.eq.f32.partialorder %v2750_v58, 0.0 }
 0x102   : > { %vm489_vm13 = vcmp.eq.f32.partialorder %v2726_v27, 0.0  ;;  %v3421_v27 = vld [vmem:[#allocation20_spill] sm:$0xff] }
 0x104   : > { %v2752_v59 = vpop.xlane.xlu1 %471 }
 0x105   : > { %v2728_v28 = vpop.xlane.xlu0 %473  ;;  %vm490_vm15 = vcmp.eq.f32.partialorder %v2752_v59, 0.0 }
 0x106   : > { %3397 = vst [vmem:[#allocation23_spill] sm:$0xff] %v2728_v28 }
 0x108   : > { %v2754_v60 = vpop.xlane.xlu1 %475 }
 0x109   : > { %v2730_v30 = vpop.xlane.xlu0 %751  ;;  %3401 = vst [vmem:[#allocation27_spill] sm:$0xff] %v2754_v60 }
 0x10a   : > { %vm783_vm14 = vcmp.eq.f32.partialorder %v2730_v30, 0.0 }
 0x10c   : > { %v2756_v61 = vpop.xlane.xlu1 %753 }
 0x10d   : > { %v2732_v31 = vpop.xlane.xlu0 %755  ;;  %vm784_vm0 = vcmp.eq.f32.partialorder %v2756_v61, 0.0 }
 0x10e   : > { %3398 = vst [vmem:[#allocation24_spill] sm:$0xff] %v2732_v31 }
 0x110   : > { %v2758_v8 = vpop.xlane.xlu1 %757 }
 0x111   : > { %v2734_v32 = vpop.xlane.xlu0 %759  ;;  %3402 = vst [vmem:[#allocation28_spill] sm:$0xff] %v2758_v8 }
 0x112   : > { %3399 = vst [vmem:[#allocation25_spill] sm:$0xff] %v2734_v32 }
 0x114   : > { %v2764_v28 = vpop.xlane.xlu1 %761 }
 0x115   : > { %v764_v35 = vpop.xlane.xlu0 %763  ;;  %3403 = vst [vmem:[#allocation29_spill] sm:$0xff] %v2764_v28 }
 0x116   : > { %vm789_vm1 = vcmp.eq.f32.partialorder %v764_v35, 0.0 }
 0x117   : > { %v1459_v36 = vsel %vm789_vm1, 1.0, %v3362_v33 }
 0x118   : > { %v2738_v38 = vadd.f32 %v1459_v36, %v1427_v34 }
 0x11a   : > { %3400 = vst [vmem:[#allocation26_spill] sm:$0xff] %v2738_v38 }
 0x16f   : > { %v1638_v62 = vpop.f32.mrb[0].mxu0  ;;  %v1694_v63 = vpop.f32.mrb[0].mxu1 }
 0x170   : > { %1956 = vtanh.f32 %v1638_v62  ;;  %v302_v0 = vpop.f32.mrb[1].mxu0  ;;  %v608_v1 = vpop.f32.mrb[1].mxu1 }
 0x171   : > { %1958 = vtanh.f32 %v1694_v63 }
 0x172   : > { %1960 = vtanh.f32 %v302_v0 }
 0x173   : > { %1962 = vtanh.f32 %v608_v1  ;;  %v1641_v2 = vpop.f32.mrb[2].mxu0  ;;  %v1697_v3 = vpop.f32.mrb[2].mxu1 }
 0x174   : > { %1964 = vtanh.f32 %v1641_v2  ;;  %v312_v4 = vpop.f32.mrb[3].mxu0  ;;  %v618_v5 = vpop.f32.mrb[3].mxu1 }
 0x175   : > { %1966 = vtanh.f32 %v1697_v3 }
 0x176   : > { %1968 = vtanh.f32 %v312_v4 }
 0x177   : > { %1970 = vtanh.f32 %v618_v5  ;;  %v1644_v9 = vpop.f32.mrb[4].mxu0  ;;  %v1700_v20 = vpop.f32.mrb[4].mxu1 }
 0x178   : > { %1972 = vtanh.f32 %v1644_v9  ;;  %v322_v34 = vpop.f32.mrb[5].mxu0  ;;  %v628_v35 = vpop.f32.mrb[5].mxu1 }
 0x179   : > { %1974 = vtanh.f32 %v1700_v20 }
 0x17a   : > { %v1957_v36 = vpop.eup %1956  ;;  %1976 = vtanh.f32 %v322_v34 }
 0x17b   : > { %v1959_v62 = vpop.eup %1958  ;;  %v399_v63 = vmul.f32 1.442695, %v1957_v36  ;;  %1978 = vtanh.f32 %v628_v35  ;;  %v1647_v0 = vpop.f32.mrb[6].mxu0 }
 0x17c   : > { %v1703_v1 = vpop.f32.mrb[6].mxu1  ;;  %v1961_v2 = vpop.eup %1960  ;;  %v705_v33 = vmul.f32 1.442695, %v1959_v62  ;;  %1980 = vtanh.f32 %v1647_v0 }
 0x17d   : > { %v2760_v3 = vpop.f32.mrb[7].mxu0  ;;  %v2762_v4 = vpop.f32.mrb[7].mxu1  ;;  %1982 = vpow2.f32 %v399_v63  ;;  %v397_v9 = vmul.f32 1.442695, %v1961_v2 }
 0x17e   : > { %v1963_v5 = vpop.eup %1962  ;;  %1984 = vpow2.f32 %v705_v33 }
 0x17f   : > { %v1965_v38 = vpop.eup %1964  ;;  %v703_v20 = vmul.f32 1.442695, %v1963_v5  ;;  %1986 = vpow2.f32 %v397_v9  ;;  %v2766_v36 = vpop.f32.mrb[8].mxu0 }
 0x180   : > { %v1967_v34 = vpop.eup %1966  ;;  %v403_v35 = vmul.f32 1.442695, %v1965_v38  ;;  %v2768_v60 = vpop.f32.mrb[8].mxu1 }
 0x181   : > { %v1969_v62 = vpop.eup %1968  ;;  %1988 = vpow2.f32 %v703_v20  ;;  %v709_v0 = vmul.f32 1.442695, %v1967_v34  ;;  %v2770_v54 = vpop.f32.mrb[9].mxu0 }
 0x182   : > { %v2772_v55 = vpop.f32.mrb[9].mxu1  ;;  %v1971_v63 = vpop.eup %1970  ;;  %1990 = vpow2.f32 %v403_v35  ;;  %v401_v2 = vmul.f32 1.442695, %v1969_v62 }
 0x183   : > { %v1973_v52 = vpop.eup %1972  ;;  %1992 = vpow2.f32 %v709_v0  ;;  %v707_v33 = vmul.f32 1.442695, %v1971_v63  ;;  %v2774_v9 = vpop.f32.mrb[10].mxu0 }
 0x184   : > { %v1975_v5 = vpop.eup %1974  ;;  %1994 = vpow2.f32 %v401_v2  ;;  %v407_v38 = vmul.f32 1.442695, %v1973_v52  ;;  %v2776_v28 = vpop.f32.mrb[10].mxu1 }
 0x185   : > { %v1977_v32 = vpop.eup %1976  ;;  %1996 = vpow2.f32 %v707_v33  ;;  %v713_v20 = vmul.f32 1.442695, %v1975_v5  ;;  %v2778_v34 = vpop.f32.mrb[11].mxu0 }
 0x186   : > { %v2780_v53 = vpop.f32.mrb[11].mxu1  ;;  %v1979_v29 = vpop.eup %1978  ;;  %1998 = vpow2.f32 %v407_v38  ;;  %v405_v35 = vmul.f32 1.442695, %v1977_v32 }
 0x187   : > { %v1981_v62 = vpop.eup %1980  ;;  %v2782_v0 = vpop.xlane.xlu1 %765  ;;  %2000 = vpow2.f32 %v713_v20  ;;  %v711_v63 = vmul.f32 1.442695, %v1979_v29 }
 0x188   : > { %3404 = vst [vmem:[#allocation30_spill] sm:$0xff] %v2782_v0  ;;  %v1983_v52 = vpop.eup %1982  ;;  %2002 = vpow2.f32 %v405_v35  ;;  %v411_v2 = vmul.f32 1.442695, %v1981_v62  ;;  %v1656_v50 = vpop.f32.mrb[12].mxu0 }
 0x189   : > { %v2784_v25 = vpop.f32.mrb[12].mxu1  ;;  %v1985_v33 = vpop.eup %1984  ;;  %v430_v5 = vmul.f32 %v1983_v52, %v2485_v13  ;;  %2004 = vpow2.f32 %v711_v63 }
 0x18a   : > { %v2787_v8 = vpop.f32.mrb[13].mxu0  ;;  %v2789_v51 = vpop.f32.mrb[13].mxu1  ;;  %v736_v38 = vmul.f32 %v1985_v33, %v2560_v37  ;;  %v2792_v0 = vadd.f32 %v1985_v33, %v1983_v52  ;;  %2006 = vpow2.f32 %v411_v2 }
 0x18b   : > { %v1987_v32 = vpop.eup %1986  ;;  %2008 = vtanh.f32 %v1703_v1  ;;  %v2801_v31 = vpop.f32.mrb[14].mxu0 }
 0x18c   : > { %v1989_v29 = vpop.eup %1988  ;;  %v429_v20 = vmul.f32 %v1987_v32, %v2467_v6  ;;  %v2795_v62 = vadd.f32 %v736_v38, %v430_v5  ;;  %2010 = vtanh.f32 %v2760_v3  ;;  %v2803_v26 = vpop.f32.mrb[14].mxu1 }
 0x18d   : > { %v1991_v35 = vpop.eup %1990  ;;  %v735_v13 = vmul.f32 %v1989_v29, %v2470_v7  ;;  %v2798_v63 = vadd.f32 %v1989_v29, %v1987_v32  ;;  %2012 = vtanh.f32 %v2762_v4  ;;  %v2807_v6 = vpop.f32.mrb[15].mxu0 }
 0x18e   : > { %v1993_v37 = vpop.eup %1992  ;;  %v432_v52 = vmul.f32 %v1991_v35, %v2480_v11  ;;  %v2809_v1 = vpop.f32.mrb[15].mxu1  ;;  %2014 = vtanh.f32 %v2766_v36 }
 0x18f   : > { %v1995_v2 = vpop.eup %1994  ;;  %v2811_v33 = vadd.f32 %v735_v13, %v429_v20  ;;  %v738_v7 = vmul.f32 %v1993_v37, %v2570_v40  ;;  %v2814_v5 = vadd.f32 %v1993_v37, %v1991_v35  ;;  %v2817_v32 = vpop.xlane.xlu1 %769  ;;  %2016 = vtanh.f32 %v2768_v60 }
 0x190   : > { %v1997_v3 = vpop.eup %1996  ;;  %v431_v11 = vmul.f32 %v1995_v2, %v2475_v10  ;;  %2018 = vtanh.f32 %v2770_v54  ;;  %v2827_v35 = vpop.xlane.xlu0 %767 }
 0x191   : > { %v1999_v4 = vpop.eup %1998  ;;  %v2821_v38 = vadd.f32 %v738_v7, %v432_v52  ;;  %v737_v29 = vmul.f32 %v1997_v3, %v2567_v39  ;;  %v2824_v20 = vadd.f32 %v1997_v3, %v1995_v2  ;;  %2020 = vtanh.f32 %v2772_v55 }
 0x192   : > { %v2001_v40 = vpop.eup %2000  ;;  %v434_v36 = vmul.f32 %v1999_v4, %v2495_v15  ;;  %2022 = vtanh.f32 %v2774_v9 }
 0x193   : > { %v2003_v13 = vpop.eup %2002  ;;  %v2831_v10 = vadd.f32 %v737_v29, %v431_v11  ;;  %v740_v60 = vmul.f32 %v2001_v40, %v2582_v44  ;;  %v2834_v37 = vadd.f32 %v2001_v40, %v1999_v4  ;;  %2024 = vtanh.f32 %v2776_v28  ;;  %v2847_v7 = vpop.xlane.xlu1 %773 }
 0x194   : > { %v2005_v39 = vpop.eup %2004  ;;  %v433_v52 = vmul.f32 %v2003_v13, %v2492_v14  ;;  %2026 = vtanh.f32 %v2778_v34  ;;  %v2852_v11 = vpop.xlane.xlu0 %771 }
 0x195   : > { %v2839_v54 = vpop.eup %2006  ;;  %v2841_v2 = vadd.f32 %v740_v60, %v434_v36  ;;  %v739_v15 = vmul.f32 %v2005_v39, %v2579_v43  ;;  %v2844_v55 = vadd.f32 %v2005_v39, %v2003_v13  ;;  %2028 = vtanh.f32 %v2780_v53 }
 0x196   : > { %v2009_v44 = vpop.eup %2008  ;;  %2030 = vtanh.f32 %v1656_v50  ;;  %v3407_v39 = vmov 0.0  }
 0x197   : > { %3405 = vst [vmem:[#allocation31_spill] sm:$0xff] %v2844_v55  ;;  %v2011_v9 = vpop.eup %2010  ;;  %v2850_v3 = vadd.f32 %v739_v15, %v433_v52  ;;  %v717_v14 = vmul.f32 1.442695, %v2009_v44  ;;  %2032 = vtanh.f32 %v2784_v25  ;;  %v2859_v13 = vpop.xlane.xlu1 %777  ;;  %v2862_v52 = vsel %vm477_vm2, 1.0, %v3407_v39  ;;  %v3423_v55 = vld [vmem:[#allocation29_spill] sm:$0xff] }
 0x198   : > { %v2013_v28 = vpop.eup %2012  ;;  %v409_v4 = vmul.f32 1.442695, %v2011_v9  ;;  %v2865_v41 = vsel %vm479_vm3, 1.0, %v3407_v39  ;;  %v2868_v44 = vpop.xlane.xlu0 %775  ;;  %v2911_v56 = vsel %vm485_vm9, 1.0, %v3407_v39  ;;  %v1453_v61 = vsel %vm783_vm14, 1.0, %v3407_v39 }
 0x199   : > { %3406 = vst [vmem:[#allocation32_spill] sm:$0xff] %v2850_v3  ;;  %v2015_v43 = vpop.eup %2014  ;;  %2034 = vpow2.f32 %v717_v14  ;;  %v715_v29 = vmul.f32 1.442695, %v2013_v28  ;;  %v2873_v28 = vsel %vm478_vm4, 1.0, %v3407_v39  ;;  %v2984_v30 = vsel %vm489_vm13, 1.0, %v3407_v39 }
 0x19a   : > { %v2017_v34 = vpop.eup %2016  ;;  %2036 = vpow2.f32 %v409_v4  ;;  %v415_v40 = vmul.f32 1.442695, %v2015_v43  ;;  %v2878_v4 = vsel %vm480_vm5, 1.0, %v3407_v39  ;;  %vm788_vm4 = vcmp.eq.f32.partialorder %v3423_v55, 0.0 }
 0x19b   : > { %v2019_v53 = vpop.eup %2018  ;;  %2038 = vpow2.f32 %v715_v29  ;;  %v721_v36 = vmul.f32 1.442695, %v2017_v34  ;;  %vm794_vm9 = vcmp.eq.f32.partialorder %v2847_v7, 0.0 }
 0x19c   : > { %v2021_v50 = vpop.eup %2020  ;;  %2040 = vpow2.f32 %v415_v40  ;;  %v413_v25 = vmul.f32 1.442695, %v2019_v53  ;;  %v2883_v40 = vsel %vm481_vm6, 1.0, %v3407_v39  ;;  %v2887_v53 = vpop.xlane.xlu1 %781  ;;  %vm791_vm6 = vcmp.eq.f32.partialorder %v2827_v35, 0.0 }
 0x19d   : > { %v2023_v60 = vpop.eup %2022  ;;  %2042 = vpow2.f32 %v721_v36  ;;  %v719_v12 = vmul.f32 1.442695, %v2021_v50  ;;  %3408 = vst [vmem:[#allocation33_spill] sm:$0xff] %v2887_v53  ;;  %v436_v36 = vmul.f32 %v2839_v54, %v2505_v19  ;;  %v3422_v53 = vld [vmem:[#allocation25_spill] sm:$0xff]  ;;  %v1461_v35 = vsel %vm791_vm6, 1.0, %v3407_v39 }
 0x19e   : > { %v2025_v15 = vpop.eup %2024  ;;  %2044 = vpow2.f32 %v413_v25  ;;  %v419_v9 = vmul.f32 1.442695, %v2023_v60  ;;  %v2894_v60 = vsel %vm482_vm7, 1.0, %v3407_v39  ;;  %vm787_vm3 = vcmp.eq.f32.partialorder %v3422_v53, 0.0 }
 0x19f   : > { %v2027_v14 = vpop.eup %2026  ;;  %2046 = vpow2.f32 %v719_v12  ;;  %v725_v43 = vmul.f32 1.442695, %v2025_v15  ;;  %v2899_v12 = vsel %vm484_vm8, 1.0, %v3407_v39  ;;  %vm792_vm7 = vcmp.eq.f32.partialorder %v2817_v32, 0.0 }
 0x1a0   : > { %v2029_v29 = vpop.eup %2028  ;;  %2048 = vpow2.f32 %v419_v9  ;;  %v417_v17 = vmul.f32 1.442695, %v2027_v14  ;;  %v2902_v14 = vpop.xlane.xlu0 %779  ;;  %vm793_vm8 = vcmp.eq.f32.partialorder %v2852_v11, 0.0  ;;  %v1462_v11 = vsel %vm792_vm7, 1.0, %v3407_v39 }
 0x1a1   : > { %v2031_v34 = vpop.eup %2030  ;;  %2050 = vpow2.f32 %v725_v43  ;;  %v723_v16 = vmul.f32 1.442695, %v2029_v29  ;;  %3409 = vst [vmem:[#allocation34_spill] sm:$0xff] %v2902_v14  ;;  %v2916_v29 = vsel %vm486_vm10, 1.0, %v3407_v39  ;;  %v3004_v14 = vadd.f32 %v1453_v61, %v2862_v52 }
 0x1a2   : > { %v2033_v42 = vpop.eup %2032  ;;  %2052 = vpow2.f32 %v417_v17  ;;  %v423_v50 = vmul.f32 1.442695, %v2031_v34  ;;  %vm795_vm10 = vcmp.eq.f32.partialorder %v2868_v44, 0.0 }
 0x1a3   : > { %v2035_v25 = vpop.eup %2034  ;;  %2054 = vpow2.f32 %v723_v16  ;;  %v729_v15 = vmul.f32 1.442695, %v2033_v42  ;;  %v2928_v42 = vsel %vm487_vm11, 1.0, %v3407_v39  ;;  %vm796_vm11 = vcmp.eq.f32.partialorder %v2859_v13, 0.0 }
 0x1a4   : > { %v2037_v9 = vpop.eup %2036  ;;  %v742_v19 = vmul.f32 %v2035_v25, %v2592_v47  ;;  %v2906_v43 = vadd.f32 %v2035_v25, %v2839_v54  ;;  %2056 = vpow2.f32 %v423_v50  ;;  %v2945_v25 = vpop.xlane.xlu0 %1105 }
 0x1a5   : > { %v2039_v45 = vpop.eup %2038  ;;  %v435_v17 = vmul.f32 %v2037_v9, %v2502_v18  ;;  %2058 = vpow2.f32 %v729_v15 }
 0x1a6   : > { %3410 = vst [vmem:[#allocation35_spill] sm:$0xff] %v2906_v43  ;;  %v2041_v34 = vpop.eup %2040  ;;  %v2919_v47 = vadd.f32 %v742_v19, %v436_v36  ;;  %v741_v54 = vmul.f32 %v2039_v45, %v2589_v46  ;;  %v2922_v16 = vadd.f32 %v2039_v45, %v2037_v9  ;;  %2060 = vtanh.f32 %v2787_v8  ;;  %v2933_v36 = vpop.xlane.xlu1 %1107  ;;  %v3414_v19 = vld [vmem:[#allocation15_spill] sm:$0xff]  ;;  %v3415_v45 = vld [vmem:[#allocation24_spill] sm:$0xff] }
 0x1a7   : > { %v2043_v23 = vpop.eup %2042  ;;  %v438_v18 = vmul.f32 %v2041_v34, %v2517_v22  ;;  %2062 = vtanh.f32 %v2789_v51  ;;  %vm785_vm1 = vcmp.eq.f32.partialorder %v3415_v45, 0.0  ;;  %vm1138_vm13 = vcmp.eq.f32.partialorder %v2933_v36, 0.0 }
 0x1a8   : > { %3411 = vst [vmem:[#allocation36_spill] sm:$0xff] %v2919_v47  ;;  %3412 = vst [vmem:[#allocation37_spill] sm:$0xff] %v2922_v16  ;;  %v2045_v57 = vpop.eup %2044  ;;  %v2935_v46 = vadd.f32 %v741_v54, %v435_v17  ;;  %v744_v50 = vmul.f32 %v2043_v23, %v2604_v49  ;;  %v2938_v8 = vadd.f32 %v2043_v23, %v2041_v34  ;;  %2064 = vtanh.f32 %v2801_v31  ;;  %v3416_v34 = vld [vmem:[#allocation18_spill] sm:$0xff] }
 0x1a9   : > { %v2047_v24 = vpop.eup %2046  ;;  %v437_v22 = vmul.f32 %v2045_v57, %v2514_v21  ;;  %2066 = vtanh.f32 %v2803_v26 }
 0x1aa   : > { %3413 = vst [vmem:[#allocation38_spill] sm:$0xff] %v2935_v46  ;;  %v2049_v51 = vpop.eup %2048  ;;  %v2947_v15 = vadd.f32 %v744_v50, %v438_v18  ;;  %v743_v49 = vmul.f32 %v2047_v24, %v2601_v48  ;;  %v2950_v9 = vadd.f32 %v2047_v24, %v2045_v57  ;;  %2068 = vtanh.f32 %v2807_v6  ;;  %v3418_v18 = vld [vmem:[#allocation14_spill] sm:$0xff] }
 0x1ab   : > { %v2051_v31 = vpop.eup %2050  ;;  %v440_v21 = vmul.f32 %v2049_v51, %v3414_v19  ;;  %2070 = vtanh.f32 %v2809_v1  ;;  %v2966_v6 = vsel %vm488_vm12, 1.0, %v3407_v39  ;;  %v3417_v1 = vld [vmem:[#allocation28_spill] sm:$0xff]  ;;  %v1454_v24 = vsel %vm784_vm0, 1.0, %v3407_v39 }
 0x1ac   : > { %v2053_v26 = vpop.eup %2052  ;;  %v2958_v17 = vadd.f32 %v743_v49, %v437_v22  ;;  %v746_v48 = vmul.f32 %v2051_v31, %v3416_v34  ;;  %v2961_v54 = vadd.f32 %v2051_v31, %v2049_v51  ;;  %vm786_vm2 = vcmp.eq.f32.partialorder %v3417_v1, 0.0  ;;  %v2974_v22 = vpop.xlane.xlu1 %1111  ;;  %v3419_v49 = vld [vmem:[#allocation17_spill] sm:$0xff] }
 0x1ad   : > { %v2055_v23 = vpop.eup %2054  ;;  %v439_v57 = vmul.f32 %v2053_v26, %v3418_v18  ;;  %v2989_v34 = vsel %vm490_vm15, 1.0, %v3407_v39  ;;  %v3007_v45 = vadd.f32 %v1454_v24, %v2873_v28  ;;  %vm1137_vm12 = vcmp.eq.f32.partialorder %v2945_v25, 0.0 }
 0x1ae   : > { %v2057_v50 = vpop.eup %2056  ;;  %v2976_v51 = vadd.f32 %v746_v48, %v440_v21  ;;  %v745_v31 = vmul.f32 %v2055_v23, %v3419_v49  ;;  %v2979_v58 = vadd.f32 %v2055_v23, %v2053_v26  ;;  %v1455_v21 = vsel %vm785_vm1, 1.0, %v3407_v39  ;;  %v3420_v48 = vld [vmem:[#allocation16_spill] sm:$0xff]  ;;  %v2996_v23 = vpop.xlane.xlu0 %1109 }
 0x1af   : > { %v2059_v19 = vpop.eup %2058  ;;  %v442_v1 = vmul.f32 %v2057_v50, %v3420_v48  ;;  %v1456_v26 = vsel %vm786_vm2, 1.0, %v3407_v39  ;;  %v1750_v47 = vpop.f32.mrb[16].mxu0  ;;  %v3014_v52 = vadd.f32 %v1455_v21, %v2865_v41  ;;  %vm1139_vm14 = vcmp.eq.f32.partialorder %v2996_v23, 0.0 }
 0x1b0   : > { %v2061_v18 = vpop.eup %2060  ;;  %v2998_v49 = vadd.f32 %v745_v31, %v439_v57  ;;  %v748_v46 = vmul.f32 %v2059_v19, %v3421_v27  ;;  %v3001_v16 = vadd.f32 %v2059_v19, %v2057_v50  ;;  %v1762_v43 = vpop.f32.mrb[16].mxu1  ;;  %2072 = vtanh.f32 %v1750_v47 }
 0x1b1   : > { %v2063_v59 = vpop.eup %2062  ;;  %v421_v48 = vmul.f32 1.442695, %v2061_v18  ;;  %v962_v50 = vpop.f32.mrb[17].mxu0  ;;  %v3017_v28 = vadd.f32 %v1456_v26, %v2878_v4  ;;  %v1457_v18 = vsel %vm787_vm3, 1.0, %v3407_v39  ;;  %v1458_v4 = vsel %vm788_vm4, 1.0, %v3407_v39 }
 0x1b2   : > { %v2065_v3 = vpop.eup %2064  ;;  %v3011_v57 = vadd.f32 %v748_v46, %v442_v1  ;;  %v727_v31 = vmul.f32 1.442695, %v2063_v59  ;;  %v1002_v19 = vpop.f32.mrb[17].mxu1  ;;  %v3424_v46 = vld [vmem:[#allocation30_spill] sm:$0xff]  ;;  %v3044_v32 = vadd.f32 %v1458_v4, %v2894_v60  ;;  %v3054_v60 = vadd.f32 %v1461_v35, %v2911_v56 }
 0x1b3   : > { %v2067_v27 = vpop.eup %2066  ;;  %2074 = vpow2.f32 %v421_v48  ;;  %v427_v61 = vmul.f32 1.442695, %v2065_v3  ;;  %vm790_vm5 = vcmp.eq.f32.partialorder %v3424_v46, 0.0  ;;  %v3023_v1 = vpop.xlane.xlu1 %1115  ;;  %v3063_v4 = vadd.f32 %v1462_v11, %v2916_v29  ;;  %v2180_v11 = vld [vmem:[%s2446_s4 + $0x60] sm:$0xff] }
 0x1b4   : > { %v2069_v24 = vpop.eup %2068  ;;  %v3025_v47 = vpop.xlane.xlu0 %1113  ;;  %2076 = vpow2.f32 %v727_v31  ;;  %v733_v59 = vmul.f32 1.442695, %v2067_v27  ;;  %v3034_v27 = vadd.f32 %v1457_v18, %v2883_v40  ;;  %v1460_v55 = vsel %vm790_vm5, 1.0, %v3407_v39 }
 0x1b5   : > { %v2071_v41 = vpop.eup %2070  ;;  %2078 = vpow2.f32 %v427_v61  ;;  %v425_v3 = vmul.f32 1.442695, %v2069_v24  ;;  %v1753_v21 = vpop.f32.mrb[18].mxu0  ;;  %v1463_v40 = vsel %vm793_vm8, 1.0, %v3407_v39  ;;  %v3049_v7 = vadd.f32 %v1460_v55, %v2899_v12 }
 0x1b6   : > { %v1765_v53 = vpop.f32.mrb[18].mxu1  ;;  %2080 = vpow2.f32 %v733_v59  ;;  %v731_v26 = vmul.f32 1.442695, %v2071_v41  ;;  %v972_v48 = vpop.f32.mrb[19].mxu0  ;;  %3425 = vst [vmem:[#allocation15_spill] sm:$0xff] %v3034_v27  ;;  %v1464_v18 = vsel %vm794_vm9, 1.0, %v3407_v39 }
 0x1b7   : > { %v1012_v31 = vpop.f32.mrb[19].mxu1  ;;  %2082 = vpow2.f32 %v425_v3  ;;  %v1756_v61 = vpop.f32.mrb[20].mxu0  ;;  %3426 = vst [vmem:[#allocation24_spill] sm:$0xff] %v3049_v7  ;;  %v1465_v41 = vsel %vm795_vm10, 1.0, %v3407_v39  ;;  %v3074_v13 = vadd.f32 %v1464_v18, %v2966_v6  ;;  %v1485_v29 = vsel %vm1137_vm12, 1.0, %v3407_v39 }
 0x1b8   : > { %2084 = vpow2.f32 %v731_v26  ;;  %v1768_v24 = vpop.f32.mrb[20].mxu1  ;;  %v982_v46 = vpop.f32.mrb[21].mxu0  ;;  %v3082_v35 = vadd.f32 %v1465_v41, %v2984_v30  ;;  %vm1140_vm15 = vcmp.eq.f32.partialorder %v2974_v22, 0.0  ;;  %vm1142_vm2 = vcmp.eq.f32.partialorder %v3023_v1, 0.0 }
 0x1b9   : > { %2086 = vtanh.f32 %v1762_v43  ;;  %v1022_v59 = vpop.f32.mrb[21].mxu1  ;;  %v1466_v43 = vsel %vm796_vm11, 1.0, %v3407_v39  ;;  %v3069_v56 = vpop.xlane.xlu1 %1119  ;;  %vm1141_vm3 = vcmp.eq.f32.partialorder %v3025_v47, 0.0 }
 0x1ba   : > { %2088 = vtanh.f32 %v962_v50  ;;  %v2073_v12 = vpop.eup %2072  ;;  %v3066_v50 = vadd.f32 %v1463_v40, %v2928_v42  ;;  %v3071_v3 = vpop.xlane.xlu0 %1117  ;;  %3428 = vst [vmem:[#allocation28_spill] sm:$0xff] %v3082_v35  ;;  %v3431_v35 = vld [vmem:[#allocation22_spill] sm:$0xff]  ;;  %vm1144_vm7 = vcmp.eq.f32.partialorder %v3069_v56, 0.0 }
 0x1bb   : > { %2090 = vtanh.f32 %v1002_v19  ;;  %3427 = vst [vmem:[#allocation18_spill] sm:$0xff] %v3071_v3  ;;  %v1059_v19 = vmul.f32 1.442695, %v2073_v12  ;;  %v1759_v26 = vpop.f32.mrb[22].mxu0  ;;  %v3079_v42 = vpop.f32.mrb[22].mxu1  ;;  %v3430_v12 = vld [vmem:[#allocation19_spill] sm:$0xff] }
 0x1bc   : > { %2092 = vtanh.f32 %v1753_v21  ;;  %v3085_v21 = vadd.f32 %v1466_v43, %v2989_v34  ;;  %v3088_v40 = vpop.f32.mrb[23].mxu0  ;;  %v3090_v25 = vpop.f32.mrb[23].mxu1  ;;  %v1217_v34 = vadd.f32 %v1485_v29, %v3004_v14  ;;  %v2182_v14 = vld [vmem:[%s2446_s4 + $0x70] sm:$0xff] }
 0x1bd   : > { %v2075_v44 = vpop.eup %2074  ;;  %2094 = vtanh.f32 %v1765_v53  ;;  %v1486_v53 = vsel %vm1138_vm13, 1.0, %v3407_v39 }
 0x1be   : > { %v2077_v55 = vpop.eup %2076  ;;  %3429 = vst [vmem:[#allocation14_spill] sm:$0xff] %v3085_v21  ;;  %v441_v6 = vmul.f32 %v2180_v11, %v2075_v44  ;;  %2096 = vtanh.f32 %v972_v48  ;;  %v2181_v48 = vld [vmem:[%s2446_s4 + $0x78] sm:$0xff] }
 0x1bf   : > { %v2079_v18 = vpop.eup %2078  ;;  %v747_v3 = vmul.f32 %v2077_v55, %v3430_v12  ;;  %v3096_v7 = vadd.f32 %v2077_v55, %v2075_v44  ;;  %2098 = vpow2.f32 %v1059_v19  ;;  %v1218_v19 = vadd.f32 %v1486_v53, %v3007_v45  ;;  %v1124_v55 = vpop.xlane.xlu1 %1123 }
 0x1c0   : > { %v2081_v30 = vpop.eup %2080  ;;  %v444_v41 = vmul.f32 %v2181_v48, %v2079_v18  ;;  %2100 = vtanh.f32 %v1012_v31  ;;  %v1122_v48 = vpop.xlane.xlu0 %1121  ;;  %v1487_v45 = vsel %vm1139_vm14, 1.0, %v3407_v39  ;;  %vm1146_vm0 = vcmp.eq.f32.partialorder %v1124_v55, 0.0 }
 0x1c1   : > { %v2083_v43 = vpop.eup %2082  ;;  %v3101_v11 = vadd.f32 %v747_v3, %v441_v6  ;;  %v750_v36 = vmul.f32 %v2081_v30, %v3431_v35  ;;  %v3104_v27 = vadd.f32 %v2081_v30, %v2079_v18  ;;  %2102 = vtanh.f32 %v1756_v61  ;;  %v3432_v3 = vld [vmem:[#allocation21_spill] sm:$0xff]  ;;  %v3439_v56 = vld [vmem:[#allocation28_spill] sm:$0xff] }
 0x1c2   : > { %v2085_v44 = vpop.eup %2084  ;;  %v443_v29 = vmul.f32 %v2182_v14, %v2083_v43  ;;  %2104 = vtanh.f32 %v1768_v24  ;;  %v3114_v61 = vadd.f32 1.0, %v1217_v34  ;;  %vm1145_vm1 = vcmp.eq.f32.partialorder %v1122_v48, 0.0 }
 0x1c3   : > { %v2087_v12 = vpop.eup %2086  ;;  %v3109_v31 = vadd.f32 %v750_v36, %v444_v41  ;;  %v749_v6 = vmul.f32 %v2085_v44, %v3432_v3  ;;  %v3112_v21 = vadd.f32 %v2085_v44, %v2083_v43  ;;  %2106 = vtanh.f32 %v982_v46 }
 0x1c4   : > { %v2089_v35 = vpop.eup %2088  ;;  %v1075_v18 = vmul.f32 1.442695, %v2087_v12  ;;  %2108 = vtanh.f32 %v1022_v59  ;;  %v1488_v46 = vsel %vm1140_vm15, 1.0, %v3407_v39  ;;  %v3124_v36 = vadd.f32 1.0, %v1218_v19 }
 0x1c5   : > { %v2091_v53 = vpop.eup %2090  ;;  %v3119_v24 = vadd.f32 %v749_v6, %v443_v29  ;;  %v1057_v30 = vmul.f32 1.442695, %v2089_v35  ;;  %2110 = vtanh.f32 %v1759_v26  ;;  %v1219_v23 = vadd.f32 %v1487_v45, %v3014_v52  ;;  %v2183_v52 = vld [vmem:[%s2446_s4 + $0x108] sm:$0xff] }
 0x1c6   : > { %v2093_v41 = vpop.eup %2092  ;;  %2112 = vpow2.f32 %v1075_v18  ;;  %v1073_v34 = vmul.f32 1.442695, %v2091_v53  ;;  %v1494_v26 = vsel %vm1146_vm0, 1.0, %v3407_v39  ;;  %v1220_v29 = vadd.f32 %v1488_v46, %v3017_v28  ;;  %v1128_v28 = vpop.xlane.xlu1 %1127 }
 0x1c7   : > { %v2095_v43 = vpop.eup %2094  ;;  %2114 = vpow2.f32 %v1057_v30  ;;  %v1063_v59 = vmul.f32 1.442695, %v2093_v41  ;;  %v1493_v12 = vsel %vm1145_vm1, 1.0, %v3407_v39  ;;  %v1490_v55 = vsel %vm1142_vm2, 1.0, %v3407_v39  ;;  %v1126_v41 = vpop.xlane.xlu0 %1125 }
 0x1c8   : > { %v2097_v44 = vpop.eup %2096  ;;  %2116 = vpow2.f32 %v1073_v34  ;;  %v1079_v22 = vmul.f32 1.442695, %v2095_v43  ;;  %v1226_v45 = vadd.f32 %v1494_v26, %v3063_v4  ;;  %v1225_v30 = vadd.f32 %v1493_v12, %v3054_v60 }
 0x1c9   : > { %v2099_v14 = vpop.eup %2098  ;;  %2118 = vpow2.f32 %v1063_v59  ;;  %v1061_v19 = vmul.f32 1.442695, %v2097_v44  ;;  %v3143_v43 = vadd.f32 1.0, %v1219_v23  ;;  %v3145_v59 = vadd.f32 1.0, %v1220_v29 }
 0x1ca   : > { %v2101_v48 = vpop.eup %2100  ;;  %v1090_v3 = vmul.f32 %v2183_v52, %v2099_v14  ;;  %v1202_v6 = vadd.f32 %v2099_v14, %v2792_v0  ;;  %2120 = vpow2.f32 %v1079_v22  ;;  %v3150_v44 = vsel %vm1141_vm3, 1.0, %v3407_v39 }
 0x1cb   : > { %v2103_v35 = vpop.eup %2102  ;;  %2122 = vpow2.f32 %v1061_v19  ;;  %v1077_v18 = vmul.f32 1.442695, %v2101_v48  ;;  %vm1148_vm4 = vcmp.eq.f32.partialorder %v1128_v28, 0.0  ;;  %v3153_v26 = vadd.f32 %v1490_v55, %v3044_v32  ;;  %v2184_v48 = vld [vmem:[%s2446_s4 + $0x148] sm:$0xff] }
 0x1cc   : > { %v2105_v53 = vpop.eup %2104  ;;  %v3141_v46 = vadd.f32 %v1090_v3, %v2795_v62  ;;  %2124 = vrcp.f32 %v1202_v6  ;;  %v1067_v0 = vmul.f32 1.442695, %v2103_v35  ;;  %vm1147_vm5 = vcmp.eq.f32.partialorder %v1126_v41, 0.0  ;;  %v2185_v35 = vld [vmem:[%s2446_s4 + $0x100] sm:$0xff] }
 0x1cd   : > { %v2107_v34 = vpop.eup %2106  ;;  %2126 = vpow2.f32 %v1077_v18  ;;  %v1083_v1 = vmul.f32 1.442695, %v2105_v53  ;;  %v3155_v14 = vadd.f32 1.0, %v1226_v45  ;;  %v3157_v29 = vadd.f32 1.0, %v1225_v30  ;;  %v2186_v53 = vld [vmem:[%s2446_s4 + $0x140] sm:$0xff] }
 0x1ce   : > { %v2109_v4 = vpop.eup %2108  ;;  %2128 = vpow2.f32 %v1067_v0  ;;  %v1065_v62 = vmul.f32 1.442695, %v2107_v34  ;;  %v3160_v19 = vsel %vm1148_vm4, 1.0, %v3407_v39  ;;  %v3165_v6 = vsel %vm1147_vm5, 1.0, %v3407_v39  ;;  %v3174_v0 = vpop.xlane.xlu1 %1131 }
 0x1cf   : > { %v2111_v60 = vpop.eup %2110  ;;  %2130 = vpow2.f32 %v1083_v1  ;;  %v1081_v23 = vmul.f32 1.442695, %v2109_v4  ;;  %vm1150_vm6 = vcmp.eq.f32.partialorder %v3174_v0, 0.0 }
 0x1d0   : > { %v2113_v22 = vpop.eup %2112  ;;  %2132 = vpow2.f32 %v1065_v62  ;;  %v1071_v47 = vmul.f32 1.442695, %v2111_v60  ;;  %v2188_v60 = vld [vmem:[%s2446_s4 + $0x158] sm:$0xff] }
 0x1d1   : > { %v2115_v12 = vpop.eup %2114  ;;  %v1098_v52 = vmul.f32 %v2184_v48, %v2113_v22  ;;  %v1210_v32 = vadd.f32 %v2113_v22, %v2938_v8  ;;  %2134 = vpow2.f32 %v1081_v23 }
 0x1d2   : > { %v2117_v3 = vpop.eup %2116  ;;  %v1089_v55 = vmul.f32 %v2185_v35, %v2115_v12  ;;  %v1201_v45 = vadd.f32 %v2115_v12, %v2798_v63  ;;  %2136 = vpow2.f32 %v1071_v47  ;;  %v2187_v63 = vld [vmem:[%s2446_s4 + $0x118] sm:$0xff]  ;;  %v2189_v47 = vld [vmem:[%s2446_s4 + $0x110] sm:$0xff] }
 0x1d3   : > { %v2119_v28 = vpop.eup %2118  ;;  %v3170_v18 = vadd.f32 %v1098_v52, %v2947_v15  ;;  %2138 = vrcp.f32 %v1210_v32  ;;  %v1097_v8 = vmul.f32 %v2186_v53, %v2117_v3  ;;  %v1209_v30 = vadd.f32 %v2117_v3, %v2950_v9  ;;  %v2190_v32 = vld [vmem:[%s2446_s4 + $0x150] sm:$0xff]  ;;  %v2192_v53 = vld [vmem:[%s2446_s4 + $0x168] sm:$0xff] }
 0x1d4   : > { %v2121_v41 = vpop.eup %2120  ;;  %v3177_v34 = vadd.f32 %v1089_v55, %v2811_v33  ;;  %2140 = vrcp.f32 %v1201_v45  ;;  %v1092_v1 = vmul.f32 %v2187_v63, %v2119_v28  ;;  %v1204_v4 = vadd.f32 %v2119_v28, %v2814_v5 }
 0x1d5   : > { %v2123_v15 = vpop.eup %2122  ;;  %v3183_v62 = vadd.f32 %v1097_v8, %v2958_v17  ;;  %2142 = vrcp.f32 %v1209_v30  ;;  %v1100_v9 = vmul.f32 %v2188_v60, %v2121_v41  ;;  %v1212_v23 = vadd.f32 %v2121_v41, %v2961_v54 }
 0x1d6   : > { %v2125_v22 = vpop.eup %2124  ;;  %v3188_v33 = vadd.f32 %v1092_v1, %v2821_v38  ;;  %2144 = vrcp.f32 %v1204_v4  ;;  %v1091_v12 = vmul.f32 %v2189_v47, %v2123_v15  ;;  %v1203_v5 = vadd.f32 %v2123_v15, %v2824_v20  ;;  %v1130_v1 = vpop.xlane.xlu0 %1129 }
 0x1d7   : > { %v2127_v48 = vpop.eup %2126  ;;  %v1266_v17 = vmul.f32 %v2125_v22, %v3141_v46  ;;  %v3195_v52 = vadd.f32 %v1100_v9, %v2976_v51  ;;  %2146 = vrcp.f32 %v1212_v23  ;;  %v2191_v51 = vld [vmem:[%s2446_s4 + $0x128] sm:$0xff]  ;;  %v3434_v23 = vld [vmem:[#allocation32_spill] sm:$0xff]  ;;  %vm1149_vm8 = vcmp.eq.f32.partialorder %v1130_v1, 0.0 }
 0x1d8   : > { %v2129_v54 = vpop.eup %2128  ;;  %v3199_v38 = vadd.f32 %v1091_v12, %v2831_v10  ;;  %2148 = vrcp.f32 %v1203_v5  ;;  %v1099_v20 = vmul.f32 %v2190_v32, %v2127_v48  ;;  %v1211_v3 = vadd.f32 %v2127_v48, %v2979_v58  ;;  %v3435_v12 = vld [vmem:[#allocation35_spill] sm:$0xff] }
 0x1d9   : > { %v2131_v35 = vpop.eup %2130  ;;  %v1282_v46 = vmul.f32 %v1266_v17, %v3124_v36  ;;  %v1094_v55 = vmul.f32 %v2191_v51, %v2129_v54  ;;  %v1206_v45 = vadd.f32 %v2129_v54, %v2834_v37  ;;  %2150 = vtanh.f32 %v3079_v42  ;;  %v2193_v42 = vld [vmem:[%s2446_s4 + $0x120] sm:$0xff]  ;;  %v3433_v36 = vld [vmem:[#allocation31_spill] sm:$0xff] }
 0x1da   : > { %v2133_v28 = vpop.eup %2132  ;;  %v3208_v10 = vadd.f32 %v1099_v20, %v2998_v49  ;;  %2152 = vrcp.f32 %v1211_v3  ;;  %v1102_v8 = vmul.f32 %v2192_v53, %v2131_v35  ;;  %v1214_v58 = vadd.f32 %v2131_v35, %v3001_v16  ;;  %v2194_v16 = vld [vmem:[%s2446_s4 + $0x160] sm:$0xff]  ;;  %v3436_v20 = vld [vmem:[#allocation36_spill] sm:$0xff]  ;;  %v3438_v53 = vld [vmem:[#allocation15_spill] sm:$0xff] }
 0x1db   : > { %v2135_v30 = vpop.eup %2134  ;;  %1298 = vst [vmem:[%s3214_s20 + $0x8] sm:$0xff] %v1282_v46  ;;  %v3218_v37 = vadd.f32 %v1094_v55, %v2841_v2  ;;  %2154 = vrcp.f32 %v1206_v45  ;;  %v1093_v49 = vmul.f32 %v2193_v42, %v2133_v28  ;;  %v1205_v41 = vadd.f32 %v2133_v28, %v3433_v36  ;;  %v2195_v2 = vld [vmem:[%s2446_s4 + $0x138] sm:$0xff] }
 0x1dc   : > { %v2137_v63 = vpop.eup %2136  ;;  %v3223_v4 = vadd.f32 %v1102_v8, %v3011_v57  ;;  %2156 = vrcp.f32 %v1214_v58  ;;  %v1101_v15 = vmul.f32 %v2194_v16, %v2135_v30  ;;  %v1213_v60 = vadd.f32 %v2135_v30, %v3096_v7 }
 0x1dd   : > { %v2139_v9 = vpop.eup %2138  ;;  %v1189_v22 = vadd.f32 %v1093_v49, %v3434_v23  ;;  %2158 = vrcp.f32 %v1205_v41  ;;  %v1096_v47 = vmul.f32 %v2195_v2, %v2137_v63  ;;  %v1208_v5 = vadd.f32 %v2137_v63, %v3435_v12  ;;  %v3440_v41 = vld [vmem:[#allocation24_spill] sm:$0xff] }
 0x1de   : > { %v2141_v48 = vpop.eup %2140  ;;  %v1228_v17 = vadd.f32 %v3160_v19, %v3074_v13  ;;  %v1274_v57 = vmul.f32 %v2139_v9, %v3170_v18  ;;  %v1197_v54 = vadd.f32 %v1101_v15, %v3101_v11  ;;  %2160 = vrcp.f32 %v1213_v60 }
 0x1df   : > { %v2143_v32 = vpop.eup %2142  ;;  %v1265_v7 = vmul.f32 %v2141_v48, %v3177_v34  ;;  %v1192_v3 = vadd.f32 %v1096_v47, %v3436_v20  ;;  %2162 = vrcp.f32 %v1208_v5  ;;  %v1498_v46 = vsel %vm1150_vm6, 1.0, %v3407_v39 }
 0x1e0   : > { %v2145_v35 = vpop.eup %2144  ;;  %v1290_v13 = vmul.f32 %v1274_v57, %v3155_v14  ;;  %v1273_v19 = vmul.f32 %v2143_v32, %v3183_v62  ;;  %2164 = vtanh.f32 %v3088_v40  ;;  %v1227_v18 = vadd.f32 %v3165_v6, %v3066_v50 }
 0x1e1   : > { %v2147_v11 = vpop.eup %2146  ;;  %v1281_v34 = vmul.f32 %v1265_v7, %v3114_v61  ;;  %v1268_v51 = vmul.f32 %v2145_v35, %v3188_v33  ;;  %2166 = vtanh.f32 %v3090_v25  ;;  %v1244_v55 = vadd.f32 1.0, %v1228_v17  ;;  %v3437_v61 = vld [vmem:[#allocation14_spill] sm:$0xff]  ;;  %v3441_v35 = vld [vmem:[#allocation27_spill] sm:$0xff] }
 0x1e2   : > { %v2149_v0 = vpop.eup %2148  ;;  %v1497_v14 = vsel %vm1149_vm8, 1.0, %v3407_v39  ;;  %1306 = vst [vmem:[%s3214_s20 + $0x48] sm:$0xff] %v1290_v13  ;;  %v1289_v62 = vmul.f32 %v1273_v19, %v3157_v29  ;;  %v1276_v40 = vmul.f32 %v2147_v11, %v3195_v52  ;;  %v1492_v50 = vsel %vm1144_vm7, 1.0, %v3407_v39 }
 0x1e3   : > { %v2151_v45 = vpop.eup %2150  ;;  %v1230_v6 = vadd.f32 %v1498_v46, %v3437_v61  ;;  %1297 = vst [vmem:[%s3214_s20] sm:$0xff] %v1281_v34  ;;  %v1284_v25 = vmul.f32 %v1268_v51, %v3145_v59  ;;  %v1267_v33 = vmul.f32 %v2149_v0, %v3199_v38  ;;  %v1221_v29 = vadd.f32 %v3150_v44, %v3438_v53  ;;  %v1136_v46 = vpop.xlane.xlu1 %1135 }
 0x1e4   : > { %v2153_v28 = vpop.eup %2152  ;;  %1305 = vst [vmem:[%s3214_s20 + $0x40] sm:$0xff] %v1289_v62  ;;  %v1292_v8 = vmul.f32 %v1276_v40, %v1244_v55  ;;  %v1087_v52 = vmul.f32 1.442695, %v2151_v45  ;;  %v1243_v30 = vadd.f32 1.0, %v1227_v18  ;;  %v1229_v42 = vadd.f32 %v1497_v14, %v3439_v56  ;;  %v3443_v55 = vld [vmem:[#allocation23_spill] sm:$0xff]  ;;  %v3444_v40 = vld [vmem:[#allocation34_spill] sm:$0xff] }
 0x1e5   : > { %v2155_v58 = vpop.eup %2154  ;;  %1300 = vst [vmem:[%s3214_s20 + $0x18] sm:$0xff] %v1284_v25  ;;  %v1283_v49 = vmul.f32 %v1267_v33, %v3143_v43  ;;  %v1275_v59 = vmul.f32 %v2153_v28, %v3208_v10  ;;  %v1238_v38 = vadd.f32 1.0, %v3153_v26  ;;  %v1224_v63 = vadd.f32 %v1492_v50, %v3440_v41  ;;  %v2197_v45 = vld [vmem:[%s2446_s4 + $0x130] sm:$0xff]  ;;  %v3445_v50 = vld [vmem:[#allocation37_spill] sm:$0xff]  ;;  %v3448_v41 = vld [vmem:[#allocation26_spill] sm:$0xff] }
 0x1e6   : > { %v2157_v36 = vpop.eup %2156  ;;  %1308 = vst [vmem:[%s3214_s20 + $0x58] sm:$0xff] %v1292_v8  ;;  %v1270_v44 = vmul.f32 %v2155_v58, %v3218_v37  ;;  %2168 = vpow2.f32 %v1087_v52  ;;  %v1246_v16 = vadd.f32 1.0, %v1230_v6  ;;  %v1237_v10 = vadd.f32 1.0, %v1221_v29  ;;  %v1134_v6 = vpop.xlane.xlu0 %1133  ;;  %v2198_v25 = vld [vmem:[%s2446_s4 + $0x170] sm:$0xff]  ;;  %v3446_v29 = vld [vmem:[#allocation38_spill] sm:$0xff] }
 0x1e7   : > { %v2159_v1 = vpop.eup %2158  ;;  %1299 = vst [vmem:[%s3214_s20 + $0x10] sm:$0xff] %v1283_v49  ;;  %v1291_v15 = vmul.f32 %v1275_v59, %v1243_v30  ;;  %v1278_v60 = vmul.f32 %v2157_v36, %v3223_v4  ;;  %v1245_v2 = vadd.f32 1.0, %v1229_v42  ;;  %v1240_v5 = vadd.f32 1.0, %v1224_v63  ;;  %v3447_v58 = vld [vmem:[#allocation18_spill] sm:$0xff] }
 0x1e8   : > { %v2161_v43 = vpop.eup %2160  ;;  %v1286_v9 = vmul.f32 %v1270_v44, %v1238_v38  ;;  %v1269_v26 = vmul.f32 %v2159_v1, %v1189_v22  ;;  %vm492_vm9 = vcmp.eq.f32.partialorder %v3441_v35, 0.0  ;;  %vm1152_vm11 = vcmp.eq.f32.partialorder %v1136_v46, 0.0 }
 0x1e9   : > { %v2163_v23 = vpop.eup %2162  ;;  %1307 = vst [vmem:[%s3214_s20 + $0x50] sm:$0xff] %v1291_v15  ;;  %v1294_v47 = vmul.f32 %v1278_v60, %v1246_v16  ;;  %v1277_v37 = vmul.f32 %v2161_v43, %v1197_v54  ;;  %v3442_v54 = vld [vmem:[#allocation33_spill] sm:$0xff]  ;;  %v1436_v11 = vsel %vm492_vm9, 1.0, %v3407_v39  ;;  %vm491_vm12 = vcmp.eq.f32.partialorder %v3443_v55, 0.0 }
 0x1ea   : > { %v2165_v12 = vpop.eup %2164  ;;  %1302 = vst [vmem:[%s3214_s20 + $0x28] sm:$0xff] %v1286_v9  ;;  %v1285_v48 = vmul.f32 %v1269_v26, %v1237_v10  ;;  %v1272_v17 = vmul.f32 %v2163_v23, %v1192_v3  ;;  %vm798_vm10 = vcmp.eq.f32.partialorder %v3442_v54, 0.0  ;;  %v2196_v3 = vld [vmem:[%s2446_s4 + $0x178] sm:$0xff]  ;;  %v1500_v14 = vsel %vm1152_vm11, 1.0, %v3407_v39 }
 0x1eb   : > { %v2167_v4 = vpop.eup %2166  ;;  %1310 = vst [vmem:[%s3214_s20 + $0x68] sm:$0xff] %v1294_v47  ;;  %v1293_v57 = vmul.f32 %v1277_v37, %v1245_v2  ;;  %v1069_v32 = vmul.f32 1.442695, %v2165_v12  ;;  %v1468_v18 = vsel %vm798_vm10, 1.0, %v3407_v39  ;;  %vm797_vm13 = vcmp.eq.f32.partialorder %v3444_v40, 0.0 }
 0x1ec   : > { %1301 = vst [vmem:[%s3214_s20 + $0x20] sm:$0xff] %v1285_v48  ;;  %v1288_v7 = vmul.f32 %v1272_v17, %v1240_v5  ;;  %v1085_v22 = vmul.f32 1.442695, %v2167_v4  ;;  %v878_v51 = vadd.f32 %v1468_v18, %v1436_v11  ;;  %v1435_v28 = vsel %vm491_vm12, 1.0, %v3407_v39 }
 0x1ed   : > { %1309 = vst [vmem:[%s3214_s20 + $0x60] sm:$0xff] %v1293_v57  ;;  %2170 = vpow2.f32 %v1069_v32  ;;  %v1467_v52 = vsel %vm797_vm13, 1.0, %v3407_v39  ;;  %vm1143_vm14 = vcmp.eq.f32.partialorder %v3447_v58, 0.0  ;;  %vm1151_vm15 = vcmp.eq.f32.partialorder %v1134_v6, 0.0 }
 0x1ee   : > { %1304 = vst [vmem:[%s3214_s20 + $0x38] sm:$0xff] %v1288_v7  ;;  %2172 = vpow2.f32 %v1085_v22  ;;  %v1232_v53 = vadd.f32 %v1500_v14, %v878_v51  ;;  %v877_v42 = vadd.f32 %v1467_v52, %v1435_v28  ;;  %v1499_v36 = vsel %vm1151_vm15, 1.0, %v3407_v39 }
 0x1f0   : > { %v2169_v20 = vpop.eup %2168  ;;  %v1248_v49 = vadd.f32 1.0, %v1232_v53  ;;  %v1231_v44 = vadd.f32 %v1499_v36, %v877_v42 }
 0x1f1   : > { %v1104_v13 = vmul.f32 %v2196_v3, %v2169_v20  ;;  %v1216_v19 = vadd.f32 %v2169_v20, %v3104_v27 }
 0x1f2   : > { %v1247_v60 = vadd.f32 1.0, %v1231_v44 }
 0x1f3   : > { %v1200_v34 = vadd.f32 %v1104_v13, %v3109_v31  ;;  %2174 = vrcp.f32 %v1216_v19 }
 0x1f7   : > { %v2171_v0 = vpop.eup %2170 }
 0x1f8   : > { %v2173_v62 = vpop.eup %2172  ;;  %v1095_v27 = vmul.f32 %v2197_v45, %v2171_v0  ;;  %v1207_v61 = vadd.f32 %v2171_v0, %v3445_v50 }
 0x1f9   : > { %v1103_v33 = vmul.f32 %v2198_v25, %v2173_v62  ;;  %v1215_v31 = vadd.f32 %v2173_v62, %v3112_v21  ;;  %v1491_v21 = vsel %vm1143_vm14, 1.0, %v3407_v39 }
 0x1fa   : > { %v1191_v8 = vadd.f32 %v1095_v27, %v3446_v29  ;;  %2176 = vrcp.f32 %v1207_v61  ;;  %v1223_v63 = vadd.f32 %v1491_v21, %v3448_v41 }
 0x1fb   : > { %v1199_v30 = vadd.f32 %v1103_v33, %v3119_v24  ;;  %2178 = vrcp.f32 %v1215_v31 }
 0x1fc   : > { %v1239_v16 = vadd.f32 1.0, %v1223_v63 }
 0x1fd   : > { %v2175_v56 = vpop.eup %2174 }
 0x1fe   : > { %v1280_v59 = vmul.f32 %v2175_v56, %v1200_v34 }
 0x200   : > { %v1296_v38 = vmul.f32 %v1280_v59, %v1248_v49 }
 0x202   : > { %1312 = vst [vmem:[%s3214_s20 + $0x78] sm:$0xff] %v1296_v38 }
 0x204   : > { %v2177_v1 = vpop.eup %2176 }
 0x205   : > { %v2179_v24 = vpop.eup %2178  ;;  %v1271_v15 = vmul.f32 %v2177_v1, %v1191_v8 }
 0x206   : > { %v1279_v43 = vmul.f32 %v2179_v24, %v1199_v30 }
 0x207   : > { %v1287_v10 = vmul.f32 %v1271_v15, %v1239_v16 }
 0x208   : > { %v1295_v39 = vmul.f32 %v1279_v43, %v1247_v60 }
 0x209   : > { %1303 = vst [vmem:[%s3214_s20 + $0x30] sm:$0xff] %v1287_v10 }
 0x20a   : > { %1311 = vst [vmem:[%s3214_s20 + $0x70] sm:$0xff] %v1295_v39 }
 0x20b   : > { %2240 = shalt.err (!%p2237_p1)
}
 0x20c   : > { %s2241_s16 = scalar_lea.hbm %s3306_s5, 2048  ;;  %s2245_s27 = scalar_lea.hbm %s3356_s2, 4096 }
 0x20d   : > { %p2242_p4 = scmp.ne.s32.totalorder %s3306_s5, %s2241_s16  ;;  %p2246_p11 = scmp.lt.u32.totalorder %s3306_s5, %s3356_s2 }
 0x20e   : > { %p2247_p12 = scmp.lt.u32.totalorder %s2245_s27, %s2241_s16  ;;  %p2249_p3 = scmp.lt.u32.totalorder %s2241_s16, %s3306_s5 }
 0x20f   : > { %p2243_p5 = pnand %p2242_p4, %p3449_p2 }
 0x210   : > { %p2248_p13 = por %p2247_p12, %p2246_p11 }
 0x211   : > { %p2244_p6 = pneg %p2243_p5 }
 0x212   : > { %p2250_p7 = por %p2249_p3, %p2248_p13 }
 0x214   : > { %p2251_p8 = pnand %p2250_p7, %p2244_p6 }
 0x216   : > { %2254 = shalt.err (!%p2251_p8)
}
 0x217   : > { %s2310_s4 = smov 128   ;;  %s2311_s19 = smov 8  }
 0x218   : > { %1899 = dma.vmem_to_hbm [thread:$0]  (%p3449_p2), %s3308_s17, 2048, %s3306_s5, %s1314_s13, %s2310_s4, %s2310_s4, %s2311_s19  }
 0x219 PF: > { %s1342_s20 = sand.u32 1, %s2285_s9   ;;  %p3450_p9 = scmp.ne.s32.totalorder %s3380_s22, 0 }
 0x21a   : > { %s1343_s23 = scalar_lea.sflag [#allocation4], %s1342_s20 }
 0x21b   : > { %p1906_p10 = pnand %p1413_p0, %p3450_p9 }
 0x21d   : > { %2280 = dma.done.wait (!%p1906_p10), %s1343_s23, 2048  }
 0x21e   : > { %2282 = vsyncadd (!%p1906_p10), %s1343_s23, 4294965248  ;;  %p16_p1 = scmp.ge.s32.totalorder %s2352_s15, 4   ;;  %s3451_s9 = smov %s2289_s10 }
 0x21f   : > { %s3452_s10 = smov %s2293_s11  ;;  %s3453_s11 = smov %s2364_s18 }
 0x220   : > { %s3454_s12 = smov %s2352_s15  ;;  %18 = sbr.rel (!%p16_p1) target bundleno = 6 (0x6), region = 84 }
 0x227   :  { %1348 = vsyncpa [#allocation3], 1 }
 0x228   :  { %1350 = vsyncpa [#allocation3 + $0x1], 1 }
 0x229   :  { %1351 = vsyncpa [#allocation6], 1 }
 0x22a   :  { %1352 = vsyncpa [#allocation4], 1 }
 0x22b   :  { %1354 = vsyncpa [#allocation4 + $0x1], 1 }

</bundles_post_ra>
